<compile_context>
chip_gen: v6e
topology: v6e:2x2x1
jax: 0.10.0
libtpu: 0.0.40
codegen_flags: <defaults>
</compile_context>

<pallas_src>
import jax
import jax.numpy as jnp
from jax.experimental import pallas as pl
from jax.experimental.pallas import tpu as pltpu

IN_FEATURES = 28 * 28      # 784
HIDDEN = 1024
NUM_CLASSES = 10
OUT_PAD = 128              # lane-dense padded output width (true logits = 10)


def _round_up(n, m):
    return ((n + m - 1) // m) * m


def mlp_kernel(x_ref, w1_ref, b1_ref, w2_ref, b2_ref, o_ref):
    # x_ref:  (TM, 784)   f32       w1_ref: (784, 1024) bf16
    # b1_ref: (1, 1024)   f32       w2_ref: (1024, 128) bf16
    # b2_ref: (1, 128)    f32       o_ref:  (TM, 128)   f32
    # Cast x to bf16 at the MXU boundary (kernel-internal; no wrapper pass).
    x_bf16 = x_ref[...].astype(jnp.bfloat16)
    # fc1 on the MXU: bf16 operands, f32 accumulation.
    h = jnp.dot(x_bf16, w1_ref[...], preferred_element_type=jnp.float32)
    # Bias + ReLU in f32 on the VPU (hidden under MXU time; v5e-safe).
    h = jnp.maximum(h + b1_ref[...], 0.0)
    # fc2: cast the activation to bf16 only at the MXU boundary.
    out = jnp.dot(h.astype(jnp.bfloat16), w2_ref[...],
                  preferred_element_type=jnp.float32)
    o_ref[...] = (out + b2_ref[...]).astype(o_ref.dtype)


def prepare_params(w1, b1, w2, b2):
    """One-time conversion to the MXU-ready layout (do NOT call per step).

    w1: (784, 1024), b1: (1024,), w2: (1024, 10), b2: (10,)  -- f32 params.
    Returns (w1_bf16, b1_2d_f32, w2_padded_bf16, b2_padded_f32).
    """
    w1_bf16 = w1.astype(jnp.bfloat16)                                   # (784, 1024)
    b1_2d = b1.astype(jnp.float32).reshape(1, HIDDEN)                   # (1, 1024)
    w2_pad = jnp.zeros((HIDDEN, OUT_PAD), jnp.bfloat16)
    w2_pad = w2_pad.at[:, :NUM_CLASSES].set(w2.astype(jnp.bfloat16))    # (1024, 128)
    b2_pad = jnp.zeros((1, OUT_PAD), jnp.float32)
    b2_pad = b2_pad.at[0, :NUM_CLASSES].set(b2.astype(jnp.float32))     # (1, 128)
    return w1_bf16, b1_2d, w2_pad, b2_pad


def simple_neural_net_forward(x, params, *, tm=512):
    """Forward pass of SimpleNeuralNet.

    x: (B, 1, 28, 28) or any shape whose trailing dims flatten to 784.
    params: output of prepare_params(...)
    Returns f32 logits of shape (B, 10).
    """
    w1_bf16, b1_2d, w2_pad, b2_pad = params
    x2d = x.reshape(-1, IN_FEATURES)      # same semantics as torch .view(-1, 784)
    if x2d.dtype != jnp.float32:
        x2d = x2d.astype(jnp.float32)
    B = x2d.shape[0]

    # Batch tile: 512 (sweep 512/1024) amortizes the ~0.35 us/step grid
    # overhead; total VMEM stays ~<14 MiB even at TM=1024. Shrink the tile for
    # tiny batches (multiple of 8 for the f32 sublane layout). No batch pad:
    # the final partial block's OOB output rows are masked by Pallas.
    TM = min(tm, _round_up(B, 8))
    grid = (pl.cdiv(B, TM),)

    out = pl.pallas_call(
        mlp_kernel,
        out_shape=jax.ShapeDtypeStruct((B, OUT_PAD), jnp.float32),
        grid_spec=pltpu.PrefetchScalarGridSpec(
            num_scalar_prefetch=0,
            grid=grid,
            in_specs=[
                # x tiles are pipelined over the batch grid axis (f32 in HBM).
                pl.BlockSpec((TM, IN_FEATURES), lambda i: (i, 0)),
                # Weights / biases: constant block index -> resident in VMEM.
                pl.BlockSpec((IN_FEATURES, HIDDEN), lambda i: (0, 0)),
                pl.BlockSpec((1, HIDDEN), lambda i: (0, 0)),
                pl.BlockSpec((HIDDEN, OUT_PAD), lambda i: (0, 0)),
                pl.BlockSpec((1, OUT_PAD), lambda i: (0, 0)),
            ],
            out_specs=pl.BlockSpec((TM, OUT_PAD), lambda i: (i, 0)),
        ),
        compiler_params=pltpu.CompilerParams(
            # Batch axis is independent. On v7x keep >=2 grid steps (B >= 2*TM)
            # so both TensorCores are used; CORE_PARALLEL is an A/B candidate.
            dimension_semantics=("parallel",),
        ),
    )(x2d, w1_bf16, b1_2d, w2_pad, b2_pad)

    return out[:, :NUM_CLASSES]


def init_params(key):
    """Deterministic init mimicking nn.Linear's default U(-1/sqrt(fan_in), 1/sqrt(fan_in))."""
    k1, k2, k3, k4 = jax.random.split(key, 4)
    lim1 = 1.0 / jnp.sqrt(float(IN_FEATURES))
    lim2 = 1.0 / jnp.sqrt(float(HIDDEN))
    # Stored already transposed: (in_features, out_features).
    w1 = jax.random.uniform(k1, (IN_FEATURES, HIDDEN), jnp.float32, -lim1, lim1)
    b1 = jax.random.uniform(k2, (HIDDEN,), jnp.float32, -lim1, lim1)
    w2 = jax.random.uniform(k3, (HIDDEN, NUM_CLASSES), jnp.float32, -lim2, lim2)
    b2 = jax.random.uniform(k4, (NUM_CLASSES,), jnp.float32, -lim2, lim2)
    return w1, b1, w2, b2


if __name__ == "__main__":
    key = jax.random.PRNGKey(0)
    k_x, k_p = jax.random.split(key)

    # Small batch of MNIST-shaped inputs (NCHW). For real serving, batch many
    # requests into one call: at small B the kernel is bound by the one-shot
    # W1 load; at large B by the MXU / x DMA stream.
    x = jax.random.normal(k_x, (2, 1, 28, 28), dtype=jnp.float32)
    w1, b1, w2, b2 = init_params(k_p)
    params = prepare_params(w1, b1, w2, b2)   # bf16-at-rest, done once

    logits = simple_neural_net_forward(x, params)
    logits = jax.block_until_ready(logits)
    assert logits.shape == (2, NUM_CLASSES)

    # Reference 1: same mixed precision (bf16 operands, f32 accumulation).
    x2d_bf = x.reshape(-1, IN_FEATURES).astype(jnp.bfloat16)
    h_ref = jnp.maximum(
        jnp.dot(x2d_bf, w1.astype(jnp.bfloat16),
                preferred_element_type=jnp.float32) + b1, 0.0)
    ref_mixed = jnp.dot(h_ref.astype(jnp.bfloat16), w2.astype(jnp.bfloat16),
                        preferred_element_type=jnp.float32) + b2
    assert jnp.allclose(logits, ref_mixed, atol=1e-2, rtol=1e-2)

    # Reference 2: pure f32 reference (looser tolerance due to bf16 operands).
    x2d = x.reshape(-1, IN_FEATURES)
    ref_f32 = jnp.maximum(x2d @ w1 + b1, 0.0) @ w2 + b2
    assert jnp.allclose(logits, ref_f32, atol=1e-1, rtol=1e-1)

    print("KERNEL_OK")
</pallas_src>

<mosaic_0001>
module attributes {stable_mosaic.version = 11 : i64} {
  func.func @mlp_kernel(%arg0: i32, %arg1: memref<8x784xf32, #tpu.memory_space<vmem>>, %arg2: memref<784x1024xbf16, #tpu.memory_space<vmem>>, %arg3: memref<1x1024xf32, #tpu.memory_space<vmem>>, %arg4: memref<1024x128xbf16, #tpu.memory_space<vmem>>, %arg5: memref<1x128xf32, #tpu.memory_space<vmem>>, %arg6: memref<8x128xf32, #tpu.memory_space<vmem>>) attributes {dimension_semantics = [#tpu.dimension_semantics<parallel>], iteration_bounds = array<i64: 1>, scalar_prefetch = 0 : i64, scratch_operands = 0 : i64, tpu.core_type = #tpu.core_type<tc>, window_params = [{transform_indices = @transform_0, window_bounds = array<i64: 8, 784>}, {pipeline_mode = #tpu.pipeline_mode<synchronous>, transform_indices = @transform_1, window_bounds = array<i64: 784, 1024>}, {pipeline_mode = #tpu.pipeline_mode<synchronous>, transform_indices = @transform_2, window_bounds = array<i64: 1, 1024>}, {pipeline_mode = #tpu.pipeline_mode<synchronous>, transform_indices = @transform_3, window_bounds = array<i64: 1024, 128>}, {pipeline_mode = #tpu.pipeline_mode<synchronous>, transform_indices = @transform_4, window_bounds = array<i64: 1, 128>}, {transform_indices = @transform_5, window_bounds = array<i64: 8, 128>}]} {
    %c0 = arith.constant 0 : index
    %c0_0 = arith.constant 0 : index
    %0 = vector.load %arg1[%c0, %c0_0] : memref<8x784xf32, #tpu.memory_space<vmem>>, vector<8x784xf32>
    %1 = arith.truncf %0 : vector<8x784xf32> to vector<8x784xbf16>
    %c0_1 = arith.constant 0 : index
    %c0_2 = arith.constant 0 : index
    %2 = vector.load %arg2[%c0_1, %c0_2] : memref<784x1024xbf16, #tpu.memory_space<vmem>>, vector<784x1024xbf16>
    %cst = arith.constant dense<0.000000e+00> : vector<8x1024xf32>
    %3 = tpu.matmul %1, %2, %cst {dimension_numbers = #tpu.dot_dimension_numbers<[1], [0], [0], [1], [0, 0, 1, 1], [], []>} : vector<8x784xbf16>, vector<784x1024xbf16>, vector<8x1024xf32> -> vector<8x1024xf32>
    %c0_3 = arith.constant 0 : index
    %c0_4 = arith.constant 0 : index
    %4 = vector.load %arg3[%c0_3, %c0_4] : memref<1x1024xf32, #tpu.memory_space<vmem>>, vector<1x1024xf32>
    %5 = vector.broadcast %4 : vector<1x1024xf32> to vector<8x1024xf32>
    %6 = arith.addf %3, %5 : vector<8x1024xf32>
    %cst_5 = arith.constant 0.000000e+00 : f32
    %7 = vector.broadcast %cst_5 : f32 to vector<8x1024xf32>
    %8 = arith.maximumf %6, %7 : vector<8x1024xf32>
    %9 = arith.truncf %8 : vector<8x1024xf32> to vector<8x1024xbf16>
    %c0_6 = arith.constant 0 : index
    %c0_7 = arith.constant 0 : index
    %10 = vector.load %arg4[%c0_6, %c0_7] : memref<1024x128xbf16, #tpu.memory_space<vmem>>, vector<1024x128xbf16>
    %cst_8 = arith.constant dense<0.000000e+00> : vector<8x128xf32>
    %11 = tpu.matmul %9, %10, %cst_8 {dimension_numbers = #tpu.dot_dimension_numbers<[1], [0], [0], [1], [0, 0, 1, 1], [], []>} : vector<8x1024xbf16>, vector<1024x128xbf16>, vector<8x128xf32> -> vector<8x128xf32>
    %c0_9 = arith.constant 0 : index
    %c0_10 = arith.constant 0 : index
    %12 = vector.load %arg5[%c0_9, %c0_10] : memref<1x128xf32, #tpu.memory_space<vmem>>, vector<1x128xf32>
    %13 = vector.broadcast %12 : vector<1x128xf32> to vector<8x128xf32>
    %14 = arith.addf %11, %13 : vector<8x128xf32>
    %c0_11 = arith.constant 0 : index
    %c0_12 = arith.constant 0 : index
    %15 = vector.load %arg6[%c0_11, %c0_12] : memref<8x128xf32, #tpu.memory_space<vmem>>, vector<8x128xf32>
    tpu.vector_store %arg6[%c0_11, %c0_12], %14 {strides = array<i32>} : memref<8x128xf32, #tpu.memory_space<vmem>>, vector<8x128xf32>,
    return
  }
  func.func @transform_0(%arg0: i32) -> (i32, i32) {
    %c0_i32 = arith.constant 0 : i32
    %c0_i32_0 = arith.constant 0 : i32
    return %arg0, %c0_i32 : i32, i32
  }
  func.func @transform_1(%arg0: i32) -> (i32, i32) {
    %c0_i32 = arith.constant 0 : i32
    %c0_i32_0 = arith.constant 0 : i32
    %c0_i32_1 = arith.constant 0 : i32
    return %c0_i32, %c0_i32_0 : i32, i32
  }
  func.func @transform_2(%arg0: i32) -> (i32, i32) {
    %c0_i32 = arith.constant 0 : i32
    %c0_i32_0 = arith.constant 0 : i32
    %c0_i32_1 = arith.constant 0 : i32
    return %c0_i32, %c0_i32_0 : i32, i32
  }
  func.func @transform_3(%arg0: i32) -> (i32, i32) {
    %c0_i32 = arith.constant 0 : i32
    %c0_i32_0 = arith.constant 0 : i32
    %c0_i32_1 = arith.constant 0 : i32
    return %c0_i32, %c0_i32_0 : i32, i32
  }
  func.func @transform_4(%arg0: i32) -> (i32, i32) {
    %c0_i32 = arith.constant 0 : i32
    %c0_i32_0 = arith.constant 0 : i32
    %c0_i32_1 = arith.constant 0 : i32
    return %c0_i32, %c0_i32_0 : i32, i32
  }
  func.func @transform_5(%arg0: i32) -> (i32, i32) {
    %c0_i32 = arith.constant 0 : i32
    %c0_i32_0 = arith.constant 0 : i32
    return %arg0, %c0_i32 : i32, i32
  }
}

</mosaic_0001>

<bundles_post_ra>
// kernel: tpu_custom_call.1
= control target key start
LH: loop header
LB: loop body
LE: loop exit
PB: predicated region body
PF: predicated region fallthrough
CT: control target
= control target key end

     0   :  { %10 = vsyncpa [#allocation3], 0  ;;  %s4931_s0 = inlined_call_operand.hbm [shape: f32[2,784], index: 0, kind: input, shape index: {}]   ;;  %s4932_s1 = inlined_call_operand.hbm [shape: bf16[784,1024], index: 1, kind: input, shape index: {}]   ;;  %s4933_s2 = inlined_call_operand.hbm [shape: f32[1,1024], index: 2, kind: input, shape index: {}]   ;;  %s4934_s3 = inlined_call_operand.hbm [shape: bf16[1024,128], index: 3, kind: input, shape index: {}]   ;;  %s4935_s4 = inlined_call_operand.hbm [shape: f32[1,128], index: 4, kind: input, shape index: {}]   ;;  %s4936_s5 = inlined_call_operand.hbm [shape: f32[2,128], index: 5, kind: output, shape index: {}]  }
   0x1   :  { %11 = vsyncpa [#allocation6], 0 }
   0x2   :  { %12 = vsyncpa [#allocation9], 0 }
   0x3   :  { %13 = vsyncpa [#allocation4], 0 }
   0x4   :  { %18 = vsyncadd [#allocation3], 672  ;;  %s4725_s18 = smov [#allocation5]  }
   0x5   :  { %s31_s19 = sshll.u32 %s4725_s18, 4  ;;  %s32_s19 = int_to_ptr.vmem [resolvable:$true] %s31_s19 }
   0x6   :  { %s4605_s20 = scalar_lea.vmem %s32_s19, 50176  ;;  %p4610_p1 = scmp.lt.s32.totalorder %s32_s19, %s32_s19 }
   0x7   :  { %p4606_p0 = scmp.ne.s32.totalorder %s32_s19, %s4605_s20  ;;  %p4611_p2 = scmp.lt.s32.totalorder %s4605_s20, %s4605_s20 }
   0x9   :  { %p4612_p3 = por %p4611_p2, %p4610_p1 }
   0xb   :  { %p4613_p4 = pnand %p4612_p3, %p4606_p0 }
   0xd   :  { %4616 = shalt.err (!%p4613_p4)
}
   0xe   :  { %s4726_s21 = smov 512   ;;  %s4727_s22 = smov 32  }
   0xf   :  { %37 = dma.hbm_to_vmem [thread:$0]  %s4932_s1, 50176, %s32_s19, [#allocation6], %s4726_s21, %s4726_s21, %s4727_s22  }
  0x10   :  { %s4728_s25 = smov [#allocation8]  }
  0x11   :  { %s53_s26 = sshll.u32 %s4728_s25, 4  ;;  %s54_s26 = int_to_ptr.vmem [resolvable:$true] %s53_s26 }
  0x12   :  { %s4625_s27 = scalar_lea.vmem %s54_s26, 8192  ;;  %p4630_p6 = scmp.lt.s32.totalorder %s54_s26, %s54_s26 }
  0x13   :  { %p4626_p5 = scmp.ne.s32.totalorder %s54_s26, %s4625_s27  ;;  %p4631_p7 = scmp.lt.s32.totalorder %s4625_s27, %s4625_s27 }
  0x15   :  { %p4632_p8 = por %p4631_p7, %p4630_p6 }
  0x17   :  { %p4633_p9 = pnand %p4632_p8, %p4626_p5 }
  0x19   :  { %4636 = shalt.err (!%p4633_p9)
}
  0x1a   :  { %s4729_s28 = smov 64   ;;  %s4730_s29 = smov 4  }
  0x1b   :  { %59 = dma.hbm_to_vmem [thread:$0]  %s4934_s3, 8192, %s54_s26, [#allocation9], %s4729_s28, %s4729_s28, %s4730_s29  }
  0x1c   :  { %s4731_s7 = smov [#allocation2]  }
  0x1d   :  { %s19_s8 = sshll.u32 %s4731_s7, 4  ;;  %s20_s8 = int_to_ptr.vmem [resolvable:$true] %s19_s8 }
  0x1e   :  { %s4645_s1 = scalar_lea.vmem %s20_s8, 224  ;;  %s4649_s9 = scalar_lea.vmem %s20_s8, 896 }
  0x1f   :  { %p4646_p10 = scmp.ne.s32.totalorder %s20_s8, %s4645_s1  ;;  %p4650_p11 = scmp.lt.s32.totalorder %s20_s8, %s20_s8 }
  0x20   :  { %p4651_p12 = scmp.lt.s32.totalorder %s4649_s9, %s4645_s1 }
  0x22   :  { %p4652_p13 = por %p4651_p12, %p4650_p11 }
  0x24   :  { %p4653_p0 = pnand %p4652_p13, %p4646_p10 }
  0x26   :  { %4656 = shalt.err (!%p4653_p0)
}
  0x27   :  { %s4732_s10 = smov 224   ;;  %s4733_s11 = smov 14  }
  0x28   :  { %25 = dma.hbm_to_vmem [thread:$0]  %s4931_s0, 224, %s20_s8, [#allocation3], %s4732_s10, %s4732_s10, %s4733_s11  }
  0x29   :  { %s4734_s14 = smov [#allocation7]   ;;  %s4735_s3 = smov [#allocation10]  }
  0x2a   :  { %s44_s15 = sshll.u32 %s4734_s14, 4  ;;  %s66_s16 = sshll.u32 %s4735_s3, 4  ;;  %s45_s15 = int_to_ptr.vmem [resolvable:$true] %s44_s15  ;;  %s67_s16 = int_to_ptr.vmem [resolvable:$true] %s66_s16 }
  0x2b   :  { %s4665_s17 = scalar_lea.vmem %s45_s15, 128  ;;  %p4670_p2 = scmp.lt.s32.totalorder %s45_s15, %s45_s15 }
  0x2c   :  { %p4666_p1 = scmp.ne.s32.totalorder %s45_s15, %s4665_s17  ;;  %p4671_p3 = scmp.lt.s32.totalorder %s4665_s17, %s4665_s17 }
  0x2e   :  { %p4672_p4 = por %p4671_p3, %p4670_p2 }
  0x30   :  { %p4673_p5 = pnand %p4672_p4, %p4666_p1 }
  0x32   :  { %4676 = shalt.err (!%p4673_p5)
}
  0x33   :  { %47 = dma.hbm_to_vmem [thread:$0]  %s4933_s2, 128, %s45_s15, [#allocation6]  }
  0x34   :  { %s4685_s20 = scalar_lea.vmem %s67_s16, 16  ;;  %s4689_s0 = scalar_lea.vmem %s67_s16, 32 }
  0x35   :  { %p4686_p6 = scmp.ne.s32.totalorder %s67_s16, %s4685_s20  ;;  %p4690_p7 = scmp.lt.s32.totalorder %s67_s16, %s67_s16 }
  0x36   :  { %p4691_p8 = scmp.lt.s32.totalorder %s4689_s0, %s4685_s20 }
  0x38   :  { %p4692_p9 = por %p4691_p8, %p4690_p7 }
  0x3a   :  { %p4693_p10 = pnand %p4692_p9, %p4686_p6 }
  0x3c   :  { %4696 = shalt.err (!%p4693_p10)
}
  0x3d   :  { %69 = dma.hbm_to_vmem [thread:$0]  %s4935_s4, 16, %s67_s16, [#allocation9]  }
  0x3e   :  { %4717 = dma.done.wait [#allocation3], 896  }
  0x3f   :  { %4718 = vsyncadd [#allocation3], 4294966400 }
  0x40   :  { %4719 = dma.done.wait [#allocation6], 50304  }
  0x41   :  { %4720 = vsyncadd [#allocation6], 4294916992 }
  0x42   :  { %4721 = dma.done.wait [#allocation9], 8208  }
  0x43   :  { %4722 = vsyncadd [#allocation9], 4294959088  ;;  %v243_v0 = vld [vmem:[#allocation5 + $0x1c0] sm:$0xff]  ;;  %v4736_v35 = vmov 1983009808   ;;  %v109_v37 = vlaneseq  ;;  %vm2581_vm0 = vcmask 130048  }
  0x44   :  { %v247_v1 = vld [vmem:[#allocation5 + $0x1e0] sm:$0xff]  ;;  %v107_v36 = vunpack.c.l.s4 %v4736_v35 }
  0x45   :  { %v371_v2 = vld [vmem:[#allocation5 + $0x5c0] sm:$0xff]  ;;  %v4013_v3 = vcombine.high %v243_v0, %v247_v1  ;;  %v4012_v5 = vcombine.low %v243_v0, %v247_v1  ;;  %v4786_v47 = vshrl.u32 %v109_v37, 7  ;;  %v4520_v0 = vld [vmem:[#allocation2] ss:$14 sps:$4 sm:$0xff]  }
  0x46   :  { %v375_v4 = vld [vmem:[#allocation5 + $0x5e0] sm:$0xff]  ;;  %v108_v46 = vunpack.c.0.s8 %v107_v36 }
  0x47   :  { %v235_v6 = vld [vmem:[#allocation5 + $0x180] sm:$0xff]  ;;  %v4141_v8 = vcombine.high %v371_v2, %v375_v4  ;;  %v4140_v9 = vcombine.low %v371_v2, %v375_v4  ;;  %2585 = vmatprep.subr.bf16.mxu0 %v4013_v3  ;;  %v4524_v2 = vld [vmem:[#allocation2 + $0x4] ss:$14 sps:$4 sm:$0xff]   ;;  %v4525_v3 = vld [vmem:[#allocation2 + $0x20] ss:$14 sps:$4 sm:$0xff]  }
  0x48   :  { %v239_v7 = vld [vmem:[#allocation5 + $0x1a0] sm:$0xff]  ;;  %2586 = vmatpush1.bf16.msra.mxu0 %v4012_v5  ;;  %v4789_v58 = vsub.s32 %v108_v46, %v4786_v47 }
  0x49   :  { %v4005_v10 = vcombine.high %v235_v6, %v239_v7  ;;  %v363_v11 = vld [vmem:[#allocation5 + $0x580] sm:$0xff]  ;;  %2626 = vmatprep.subr.bf16.mxu1 %v4141_v8  ;;  %v4004_v18 = vcombine.low %v235_v6, %v239_v7 }
  0x4a   :  { %v367_v12 = vld [vmem:[#allocation5 + $0x5a0] sm:$0xff]  ;;  %2627 = vmatpush1.bf16.msra.mxu1 %v4140_v9  ;;  %v4792_v7 = vrot.slane %v4520_v0, %v4789_v58  ;;  %v4798_v9 = vrot.slane %v4524_v2, %v4789_v58 }
  0x4b   :  { %v227_v13 = vld [vmem:[#allocation5 + $0x140] sm:$0xff]  ;;  %v4133_v14 = vcombine.high %v363_v11, %v367_v12  ;;  %2587 = vmatprep.subr.bf16.mxu0 %v4005_v10  ;;  %v4132_v19 = vcombine.low %v363_v11, %v367_v12  ;;  %v4801_v10 = vrot.slane %v4525_v3, %v4789_v58 }
  0x4c   :  { %v231_v15 = vld [vmem:[#allocation5 + $0x160] sm:$0xff]  ;;  %2588 = vmatpush1.bf16.msra.mxu0 %v4004_v18 }
  0x4d   :  { %v355_v16 = vld [vmem:[#allocation5 + $0x540] sm:$0xff]  ;;  %v3997_v20 = vcombine.high %v227_v13, %v231_v15  ;;  %2628 = vmatprep.subr.bf16.mxu1 %v4133_v14  ;;  %v3996_v26 = vcombine.low %v227_v13, %v231_v15 }
  0x4e   :  { %v359_v17 = vld [vmem:[#allocation5 + $0x560] sm:$0xff]  ;;  %2629 = vmatpush1.bf16.msra.mxu1 %v4132_v19 }
  0x4f   :  { %v4125_v21 = vcombine.high %v355_v16, %v359_v17  ;;  %v219_v22 = vld [vmem:[#allocation5 + $0x100] sm:$0xff]  ;;  %2589 = vmatprep.subr.bf16.mxu0 %v3997_v20  ;;  %v4124_v27 = vcombine.low %v355_v16, %v359_v17  ;;  %v137_v17 = vcombine.high %v4798_v9, %v4801_v10 }
  0x50   :  { %v223_v23 = vld [vmem:[#allocation5 + $0x120] sm:$0xff]  ;;  %2590 = vmatpush1.bf16.msra.mxu0 %v3996_v26 }
  0x51   :  { %v347_v24 = vld [vmem:[#allocation5 + $0x500] sm:$0xff]  ;;  %v3989_v28 = vcombine.high %v219_v22, %v223_v23  ;;  %2630 = vmatprep.subr.bf16.mxu1 %v4125_v21  ;;  %v3988_v34 = vcombine.low %v219_v22, %v223_v23  ;;  %v4809_v22 = vpack.c.bf16 %v137_v17, %v137_v17 }
  0x52   :  { %v351_v25 = vld [vmem:[#allocation5 + $0x520] sm:$0xff]  ;;  %2631 = vmatpush1.bf16.msra.mxu1 %v4124_v27 }
  0x53   :  { %v4117_v29 = vcombine.high %v347_v24, %v351_v25  ;;  %v211_v30 = vld [vmem:[#allocation5 + $0xc0] sm:$0xff]  ;;  %2591 = vmatprep.subr.bf16.mxu0 %v3989_v28  ;;  %v4116_v38 = vcombine.low %v347_v24, %v351_v25  ;;  %2658 = vmatprep.mubr.bf16.mxu1 %v4809_v22 }
  0x54   :  { %v215_v31 = vld [vmem:[#allocation5 + $0xe0] sm:$0xff]  ;;  %2592 = vmatpush1.bf16.msra.mxu0 %v3988_v34 }
  0x55   :  { %v339_v32 = vld [vmem:[#allocation5 + $0x4c0] sm:$0xff]  ;;  %v3981_v39 = vcombine.high %v211_v30, %v215_v31  ;;  %2632 = vmatprep.subr.bf16.mxu1 %v4117_v29  ;;  %v3980_v45 = vcombine.low %v211_v30, %v215_v31 }
  0x56   :  { %v343_v33 = vld [vmem:[#allocation5 + $0x4e0] sm:$0xff]  ;;  %2633 = vmatpush1.bf16.msra.mxu1 %v4116_v38 }
  0x57   :  { %v4109_v40 = vcombine.high %v339_v32, %v343_v33  ;;  %v203_v41 = vld [vmem:[#allocation5 + $0x80] sm:$0xff]  ;;  %2593 = vmatprep.subr.bf16.mxu0 %v3981_v39  ;;  %v4108_v48 = vcombine.low %v339_v32, %v343_v33 }
  0x58   :  { %v207_v42 = vld [vmem:[#allocation5 + $0xa0] sm:$0xff]  ;;  %2594 = vmatpush1.bf16.msra.mxu0 %v3980_v45 }
  0x59   :  { %v331_v43 = vld [vmem:[#allocation5 + $0x480] sm:$0xff]  ;;  %v3973_v49 = vcombine.high %v203_v41, %v207_v42  ;;  %2634 = vmatprep.subr.bf16.mxu1 %v4109_v40  ;;  %v3972_v55 = vcombine.low %v203_v41, %v207_v42 }
  0x5a   :  { %v335_v44 = vld [vmem:[#allocation5 + $0x4a0] sm:$0xff]  ;;  %2635 = vmatpush1.bf16.msra.mxu1 %v4108_v48 }
  0x5b   :  { %v4101_v50 = vcombine.high %v331_v43, %v335_v44  ;;  %v195_v51 = vld [vmem:[#allocation5 + $0x40] sm:$0xff]  ;;  %2595 = vmatprep.subr.bf16.mxu0 %v3973_v49  ;;  %v4100_v59 = vcombine.low %v331_v43, %v335_v44 }
  0x5c   :  { %v199_v52 = vld [vmem:[#allocation5 + $0x60] sm:$0xff]  ;;  %2596 = vmatpush1.bf16.msra.mxu0 %v3972_v55 }
  0x5d   :  { %v323_v53 = vld [vmem:[#allocation5 + $0x440] sm:$0xff]  ;;  %v3965_v60 = vcombine.high %v195_v51, %v199_v52  ;;  %2636 = vmatprep.subr.bf16.mxu1 %v4101_v50  ;;  %v3964_v4 = vcombine.low %v195_v51, %v199_v52 }
  0x5e   :  { %v327_v54 = vld [vmem:[#allocation5 + $0x460] sm:$0xff]  ;;  %2637 = vmatpush1.bf16.msra.mxu1 %v4100_v59 }
  0x5f   :  { %v187_v56 = vld [vmem:[#allocation5] sm:$0xff]  ;;  %v4093_v63 = vcombine.high %v323_v53, %v327_v54  ;;  %v4092_v5 = vcombine.low %v323_v53, %v327_v54  ;;  %2597 = vmatprep.subr.bf16.mxu0 %v3965_v60 }
  0x60   :  { %v191_v57 = vld [vmem:[#allocation5 + $0x20] sm:$0xff]  ;;  %2598 = vmatpush1.bf16.msra.mxu0 %v3964_v4 }
  0x61   :  { %v315_v61 = vld [vmem:[#allocation5 + $0x400] sm:$0xff]  ;;  %v3957_v6 = vcombine.high %v187_v56, %v191_v57  ;;  %2638 = vmatprep.subr.bf16.mxu1 %v4093_v63  ;;  %v3956_v18 = vcombine.low %v187_v56, %v191_v57 }
  0x62   :  { %v319_v62 = vld [vmem:[#allocation5 + $0x420] sm:$0xff]  ;;  %2639 = vmatpush1.bf16.msra.mxu1 %v4092_v5 }
  0x63   :  { %v4522_v1 = vld [vmem:[#allocation2 + $0x1c] ss:$14 sps:$4 sm:$0xff]   ;;  %v4085_v11 = vcombine.high %v315_v61, %v319_v62  ;;  %v4084_v19 = vcombine.low %v315_v61, %v319_v62  ;;  %2599 = vmatprep.subr.bf16.mxu0 %v3957_v6 }
  0x64   :  { %v4795_v8 = vrot.slane %v4522_v1, %v4789_v58  ;;  %v307_v12 = vld [vmem:[#allocation5 + $0x3c0] sm:$0xff]  ;;  %2600 = vmatpush1.bf16.msra.mxu0 %v3956_v18 }
  0x65   :  { %v311_v13 = vld [vmem:[#allocation5 + $0x3e0] sm:$0xff]  ;;  %2640 = vmatprep.subr.bf16.mxu1 %v4085_v11 }
  0x66   :  { %v435_v14 = vld [vmem:[#allocation5 + $0x7c0] sm:$0xff]  ;;  %v135_v16 = vcombine.high %v4792_v7, %v4795_v8  ;;  %v4077_v20 = vcombine.high %v307_v12, %v311_v13  ;;  %v4076_v28 = vcombine.low %v307_v12, %v311_v13  ;;  %2641 = vmatpush1.bf16.msra.mxu1 %v4084_v19  ;;  %v4531_v19 = vld [vmem:[#allocation2 + $0x24] ss:$14 sps:$4 sm:$0xff]  }
  0x67   :  { %v439_v15 = vld [vmem:[#allocation5 + $0x7e0] sm:$0xff] }
  0x68   :  { %v4807_v21 = vpack.c.bf16 %v135_v16, %v135_v16  ;;  %v4205_v23 = vcombine.high %v435_v14, %v439_v15  ;;  %v299_v24 = vld [vmem:[#allocation5 + $0x380] sm:$0xff]  ;;  %2601 = vmatprep.subr.bf16.mxu0 %v4077_v20  ;;  %v4204_v29 = vcombine.low %v435_v14, %v439_v15 }
  0x69   :  { %v303_v25 = vld [vmem:[#allocation5 + $0x3a0] sm:$0xff]  ;;  %2602 = vmatpush2.bf16.msra.mxu0 %v4076_v28  ;;  %v134_v28 = vcombine.low %v4792_v7, %v4795_v8 }
  0x6a   :  { %v427_v26 = vld [vmem:[#allocation5 + $0x780] sm:$0xff]  ;;  %2617 = vmatprep.mubr.bf16.mxu0 %v4807_v21  ;;  %v4069_v30 = vcombine.high %v299_v24, %v303_v25  ;;  %2642 = vmatprep.subr.bf16.mxu1 %v4205_v23  ;;  %v4068_v36 = vcombine.low %v299_v24, %v303_v25 }
  0x6b   :  { %v431_v27 = vld [vmem:[#allocation5 + $0x7a0] sm:$0xff]  ;;  %2643 = vmatpush2.bf16.msra.mxu1 %v4204_v29 }
  0x6c   :  { %v4197_v31 = vcombine.high %v427_v26, %v431_v27  ;;  %v291_v32 = vld [vmem:[#allocation5 + $0x340] sm:$0xff]  ;;  %2603 = vmatprep.subr.bf16.mxu0 %v4069_v30  ;;  %v4196_v37 = vcombine.low %v427_v26, %v431_v27 }
  0x6d   :  { %v295_v33 = vld [vmem:[#allocation5 + $0x360] sm:$0xff]  ;;  %2604 = vmatpush2.bf16.msra.mxu0 %v4068_v36  ;;  %v4528_v36 = vld [vmem:[#allocation2 + $0x28] ss:$14 sps:$4 sm:$0x33]  }
  0x6e   :  { %v419_v34 = vld [vmem:[#allocation5 + $0x740] sm:$0xff]  ;;  %v4061_v38 = vcombine.high %v291_v32, %v295_v33  ;;  %2644 = vmatprep.subr.bf16.mxu1 %v4197_v31  ;;  %v4060_v44 = vcombine.low %v291_v32, %v295_v33  ;;  %v4819_v32 = vrot.slane %v4531_v19, %v4789_v58 }
  0x6f   :  { %v423_v35 = vld [vmem:[#allocation5 + $0x760] sm:$0xff]  ;;  %2645 = vmatpush2.bf16.msra.mxu1 %v4196_v37 }
  0x70   :  { %v4189_v39 = vcombine.high %v419_v34, %v423_v35  ;;  %v283_v40 = vld [vmem:[#allocation5 + $0x300] sm:$0xff]  ;;  %2605 = vmatprep.subr.bf16.mxu0 %v4061_v38  ;;  %v4188_v45 = vcombine.low %v419_v34, %v423_v35  ;;  %v136_v34 = vcombine.low %v4798_v9, %v4801_v10 }
  0x71   :  { %v287_v41 = vld [vmem:[#allocation5 + $0x320] sm:$0xff]  ;;  %2606 = vmatpush2.bf16.msra.mxu0 %v4060_v44 }
  0x72   :  { %v411_v42 = vld [vmem:[#allocation5 + $0x700] sm:$0xff]  ;;  %v4053_v46 = vcombine.high %v283_v40, %v287_v41  ;;  %2646 = vmatprep.subr.bf16.mxu1 %v4189_v39  ;;  %v4052_v53 = vcombine.low %v283_v40, %v287_v41  ;;  %v4823_v40 = vpack.c.bf16 %v134_v28, %v134_v28  ;;  %v244_v41 = vld [vmem:[#allocation5 + $0x1c8] sm:$0xff]  ;;  %v4827_v44 = vpack.c.bf16 %v136_v34, %v136_v34 }
  0x73   :  { %v415_v43 = vld [vmem:[#allocation5 + $0x720] sm:$0xff]  ;;  %2647 = vmatpush2.bf16.msra.mxu1 %v4188_v45  ;;  %v169_v45 = vrot.slane %v4528_v36, %v4789_v58  ;;  %v208_v34 = vld [vmem:[#allocation5 + $0xa8] sm:$0xff] }
  0x74   :  { %v4181_v48 = vcombine.high %v411_v42, %v415_v43  ;;  %v275_v49 = vld [vmem:[#allocation5 + $0x2c0] sm:$0xff]  ;;  %2607 = vmatprep.subr.bf16.mxu0 %v4053_v46  ;;  %v4180_v54 = vcombine.low %v411_v42, %v415_v43  ;;  %v248_v42 = vld [vmem:[#allocation5 + $0x1e8] sm:$0xff] }
  0x75   :  { %v279_v50 = vld [vmem:[#allocation5 + $0x2e0] sm:$0xff]  ;;  %2608 = vmatpush2.bf16.msra.mxu0 %v4052_v53 }
  0x76   :  { %v403_v51 = vld [vmem:[#allocation5 + $0x6c0] sm:$0xff]  ;;  %v4045_v55 = vcombine.high %v275_v49, %v279_v50  ;;  %2648 = vmatprep.subr.bf16.mxu1 %v4181_v48  ;;  %v4044_v62 = vcombine.low %v275_v49, %v279_v50  ;;  %v4015_v49 = vcombine.high %v244_v41, %v248_v42 }
  0x77   :  { %v407_v52 = vld [vmem:[#allocation5 + $0x6e0] sm:$0xff]  ;;  %2649 = vmatpush2.bf16.msra.mxu1 %v4180_v54 }
  0x78   :  { %v4173_v56 = vcombine.high %v403_v51, %v407_v52  ;;  %v267_v57 = vld [vmem:[#allocation5 + $0x280] sm:$0xff]  ;;  %2609 = vmatprep.subr.bf16.mxu0 %v4045_v55  ;;  %v4172_v63 = vcombine.low %v403_v51, %v407_v52  ;;  %v236_v55 = vld [vmem:[#allocation5 + $0x188] sm:$0xff] }
  0x79   :  { %v271_v59 = vld [vmem:[#allocation5 + $0x2a0] sm:$0xff]  ;;  %2610 = vmatpush2.bf16.msra.mxu0 %v4044_v62 }
  0x7a   :  { %v395_v60 = vld [vmem:[#allocation5 + $0x680] sm:$0xff]  ;;  %v4037_v0 = vcombine.high %v267_v57, %v271_v59  ;;  %2650 = vmatprep.subr.bf16.mxu1 %v4173_v56  ;;  %v4036_v6 = vcombine.low %v267_v57, %v271_v59  ;;  %v4737_v56 = vmov 0   ;;  %v240_v57 = vld [vmem:[#allocation5 + $0x1a8] sm:$0xff] }
  0x7b   :  { %v399_v61 = vld [vmem:[#allocation5 + $0x6a0] sm:$0xff]  ;;  %2651 = vmatpush2.bf16.msra.mxu1 %v4172_v63  ;;  %v4014_v63 = vcombine.low %v244_v41, %v248_v42  ;;  %v200_v41 = vld [vmem:[#allocation5 + $0x68] sm:$0xff] }
  0x7c   :  { %v4165_v1 = vcombine.high %v395_v60, %v399_v61  ;;  %v259_v2 = vld [vmem:[#allocation5 + $0x240] sm:$0xff]  ;;  %2611 = vmatprep.subr.bf16.mxu0 %v4037_v0  ;;  %v4164_v11 = vcombine.low %v395_v60, %v399_v61 }
  0x7d   :  { %v263_v3 = vld [vmem:[#allocation5 + $0x260] sm:$0xff]  ;;  %2612 = vmatpush2.bf16.msra.mxu0 %v4036_v6 }
  0x7e   :  { %v387_v4 = vld [vmem:[#allocation5 + $0x640] sm:$0xff]  ;;  %v4029_v12 = vcombine.high %v259_v2, %v263_v3  ;;  %2652 = vmatprep.subr.bf16.mxu1 %v4165_v1  ;;  %v4028_v20 = vcombine.low %v259_v2, %v263_v3  ;;  %v228_v1 = vld [vmem:[#allocation5 + $0x148] sm:$0xff] }
  0x7f   :  { %v391_v5 = vld [vmem:[#allocation5 + $0x660] sm:$0xff]  ;;  %2653 = vmatpush2.bf16.msra.mxu1 %v4164_v11  ;;  %v232_v2 = vld [vmem:[#allocation5 + $0x168] sm:$0xff]  ;;  %v4006_v11 = vcombine.low %v236_v55, %v240_v57 }
  0x80   :  { %v4157_v13 = vcombine.high %v387_v4, %v391_v5  ;;  %v251_v14 = vld [vmem:[#allocation5 + $0x200] sm:$0xff]  ;;  %2613 = vmatprep.subr.bf16.mxu0 %v4029_v12  ;;  %v4156_v23 = vcombine.low %v387_v4, %v391_v5  ;;  %v4007_v4 = vcombine.high %v236_v55, %v240_v57  ;;  %v3998_v19 = vcombine.low %v228_v1, %v232_v2  ;;  %v308_v57 = vld [vmem:[#allocation5 + $0x3c8] sm:$0xff] }
  0x81   :  { %v255_v15 = vld [vmem:[#allocation5 + $0x220] sm:$0xff]  ;;  %2614 = vmatpush2.bf16.msra.mxu0 %v4028_v20 }
  0x82   :  { %v379_v16 = vld [vmem:[#allocation5 + $0x600] sm:$0xff]  ;;  %v4021_v24 = vcombine.high %v251_v14, %v255_v15  ;;  %2654 = vmatprep.subr.bf16.mxu1 %v4157_v13  ;;  %v4020_v33 = vcombine.low %v251_v14, %v255_v15  ;;  %v220_v13 = vld [vmem:[#allocation5 + $0x108] sm:$0xff] }
  0x83   :  { %v383_v17 = vld [vmem:[#allocation5 + $0x620] sm:$0xff]  ;;  %2655 = vmatpush2.bf16.msra.mxu1 %v4156_v23  ;;  %v224_v14 = vld [vmem:[#allocation5 + $0x128] sm:$0xff] }
  0x84   :  { %v4530_v18 = vld [vmem:[#allocation2 + $0x8] ss:$14 sps:$4 sm:$0xff]   ;;  %v4149_v25 = vcombine.high %v379_v16, %v383_v17  ;;  %v4526_v35 = vld [vmem:[#allocation2 + $0xc] ss:$14 sps:$4 sm:$0x33]   ;;  %2615 = vmatprep.subr.bf16.mxu0 %v4021_v24  ;;  %v4148_v37 = vcombine.low %v379_v16, %v383_v17  ;;  %v3999_v16 = vcombine.high %v228_v1, %v232_v2  ;;  %v212_v23 = vld [vmem:[#allocation5 + $0xc8] sm:$0xff] }
  0x85   :  { %v499_v26 = vld [vmem:[#allocation5 + $0x9c0] sm:$0xff]  ;;  %v4816_v31 = vrot.slane %v4530_v18, %v4789_v58  ;;  %2616 = vmatpush2.bf16.msra.mxu0 %v4020_v33  ;;  %v155_v10 = vrot.slane %v4526_v35, %v4789_v58  ;;  %v216_v24 = vld [vmem:[#allocation5 + $0xe8] sm:$0xff] }
  0x86   :  { %v503_v27 = vld [vmem:[#allocation5 + $0x9e0] sm:$0xff]  ;;  %2656 = vmatprep.subr.bf16.mxu1 %v4149_v25  ;;  %v204_v33 = vld [vmem:[#allocation5 + $0x88] sm:$0xff]  ;;  %v3983_v36 = vcombine.high %v212_v23, %v216_v24 }
  0x87   :  { %v571_v29 = vld [vmem:[#allocation5 + $0xc00] sm:$0xff]  ;;  %v4269_v38 = vcombine.high %v499_v26, %v503_v27  ;;  %v171_v43 = vcombine.high %v4816_v31, %v4819_v32  ;;  %v4268_v9 = vcombine.low %v499_v26, %v503_v27  ;;  %2657 = vmatpush2.bf16.msra.mxu1 %v4148_v37  ;;  %v172_v54 = vcombine.low %v155_v10, %v169_v45 }
  0x88   :  { %v575_v30 = vld [vmem:[#allocation5 + $0xc20] sm:$0xff]  ;;  %2618 = vmatmul.mubr.bf16.vlgmr.msra.gmra.mxu0 %v4823_v40  ;;  %v3991_v26 = vcombine.high %v220_v13, %v224_v14  ;;  %v3974_v45 = vcombine.low %v204_v33, %v208_v34 }
  0x89   :  { %v4341_v7 = vcombine.high %v571_v29, %v575_v30  ;;  %v491_v8 = vld [vmem:[#allocation5 + $0x980] sm:$0xff]  ;;  %2667 = vmatprep.subr.bf16.mxu0 %v4269_v38  ;;  %v4340_v46 = vcombine.low %v571_v29, %v575_v30  ;;  %v4832_v52 = vpack.c.bf16 %v171_v43, %v171_v43  ;;  %v4837_v62 = vpack.c.bf16 %v172_v54, %v172_v54 }
  0x8a   :  { %v495_v39 = vld [vmem:[#allocation5 + $0x9a0] sm:$0xff]  ;;  %2659 = vmatmul.mubr.bf16.vlgmr.msra.gmra.mxu1 %v4827_v44  ;;  %2668 = vmatpush1.bf16.msra.mxu0 %v4268_v9  ;;  %v3990_v29 = vcombine.low %v220_v13, %v224_v14  ;;  %v3975_v43 = vcombine.high %v204_v33, %v208_v34 }
  0x8b   :  { %v4261_v48 = vcombine.high %v491_v8, %v495_v39  ;;  %2722 = vmatprep.subr.bf16.mxu1 %v4341_v7  ;;  %v483_v50 = vld [vmem:[#allocation5 + $0x940] sm:$0xff]  ;;  %v4260_v53 = vcombine.low %v491_v8, %v495_v39  ;;  %2740 = vmatprep.mubr.bf16.mxu1 %v4737_v56  ;;  %v3982_v7 = vcombine.low %v212_v23, %v216_v24  ;;  %v196_v39 = vld [vmem:[#allocation5 + $0x48] sm:$0xff] }
  0x8c   :  { %v487_v51 = vld [vmem:[#allocation5 + $0x960] sm:$0xff]  ;;  %2723 = vmatpush1.bf16.msra.mxu1 %v4340_v46  ;;  %2699 = vmatprep.mubr.bf16.mxu0 %v4832_v52 }
  0x8d   :  { %2669 = vmatprep.subr.bf16.mxu0 %v4261_v48  ;;  %v4253_v58 = vcombine.high %v483_v50, %v487_v51  ;;  %2749 = vmatprep.subr.bf16.mxu1 %v4015_v49  ;;  %v475_v59 = vld [vmem:[#allocation5 + $0x900] sm:$0xff]  ;;  %v4252_v61 = vcombine.low %v483_v50, %v487_v51  ;;  %v188_v48 = vld [vmem:[#allocation5 + $0x8] sm:$0xff]  ;;  %v3967_v51 = vcombine.high %v196_v39, %v200_v41 }
  0x8e   :  { %v479_v60 = vld [vmem:[#allocation5 + $0x920] sm:$0xff]  ;;  %2670 = vmatpush1.bf16.msra.mxu0 %v4260_v53  ;;  %v192_v49 = vld [vmem:[#allocation5 + $0x28] sm:$0xff] }
  0x8f   :  { %2671 = vmatprep.subr.bf16.mxu0 %v4253_v58  ;;  %v4245_v0 = vcombine.high %v475_v59, %v479_v60  ;;  %v467_v3 = vld [vmem:[#allocation5 + $0x8c0] sm:$0xff]  ;;  %v4244_v6 = vcombine.low %v475_v59, %v479_v60  ;;  %v3966_v58 = vcombine.low %v196_v39, %v200_v41  ;;  %v312_v59 = vld [vmem:[#allocation5 + $0x3e8] sm:$0xff]  ;;  %v3958_v1 = vcombine.low %v188_v48, %v192_v49 }
  0x90   :  { %v471_v5 = vld [vmem:[#allocation5 + $0x8e0] sm:$0xff]  ;;  %v4078_v13 = vcombine.low %v308_v57, %v312_v59 }
  0x91   :  { %v4237_v12 = vcombine.high %v467_v3, %v471_v5  ;;  %v459_v15 = vld [vmem:[#allocation5 + $0x880] sm:$0xff]  ;;  %v4236_v18 = vcombine.low %v467_v3, %v471_v5  ;;  %v300_v3 = vld [vmem:[#allocation5 + $0x388] sm:$0xff] }
  0x92   :  { %4348 = vmatmul.mubr.msk.bf16.vlgmr.msra.gmra.mxu1 %vm2581_vm0, %v4837_v62  ;;  %2672 = vmatpush1.bf16.msra.mxu0 %v4252_v61  ;;  %v463_v17 = vld [vmem:[#allocation5 + $0x8a0] sm:$0xff]  ;;  %v3959_v61 = vcombine.high %v188_v48, %v192_v49 }
  0x93   :  { %2750 = vmatpush1.bf16.msra.mxu1 %v4014_v63  ;;  %2673 = vmatprep.subr.bf16.mxu0 %v4245_v0  ;;  %v4229_v20 = vcombine.high %v459_v15, %v463_v17  ;;  %v451_v25 = vld [vmem:[#allocation5 + $0x840] sm:$0xff]  ;;  %v4228_v28 = vcombine.low %v459_v15, %v463_v17  ;;  %v292_v15 = vld [vmem:[#allocation5 + $0x348] sm:$0xff] }
  0x94   :  { %2751 = vmatprep.subr.bf16.mxu1 %v4007_v4  ;;  %2781 = vmatprep.mubr.bf16.mxu1 %v4807_v21  ;;  %v455_v27 = vld [vmem:[#allocation5 + $0x860] sm:$0xff]  ;;  %v304_v4 = vld [vmem:[#allocation5 + $0x3a8] sm:$0xff] }
  0x95   :  { %v4221_v30 = vcombine.high %v451_v25, %v455_v27  ;;  %v443_v35 = vld [vmem:[#allocation5 + $0x800] sm:$0xff]  ;;  %v4220_v38 = vcombine.low %v451_v25, %v455_v27  ;;  %v4070_v23 = vcombine.low %v300_v3, %v304_v4  ;;  %v284_v25 = vld [vmem:[#allocation5 + $0x308] sm:$0xff] }
  0x96   :  { %2674 = vmatpush1.bf16.msra.mxu0 %v4244_v6  ;;  %v447_v37 = vld [vmem:[#allocation5 + $0x820] sm:$0xff]  ;;  %v4079_v6 = vcombine.high %v308_v57, %v312_v59 }
  0x97   :  { %2752 = vmatpush1.bf16.msra.mxu1 %v4006_v11  ;;  %2675 = vmatprep.subr.bf16.mxu0 %v4237_v12  ;;  %v4213_v8 = vcombine.high %v443_v35, %v447_v37  ;;  %v563_v42 = vld [vmem:[#allocation5 + $0xbc0] sm:$0xff]  ;;  %v4212_v10 = vcombine.low %v443_v35, %v447_v37  ;;  %v276_v35 = vld [vmem:[#allocation5 + $0x2c8] sm:$0xff] }
  0x98   :  { %2753 = vmatprep.subr.bf16.mxu1 %v3999_v16  ;;  %v567_v9 = vld [vmem:[#allocation5 + $0xbe0] sm:$0xff]  ;;  %v296_v16 = vld [vmem:[#allocation5 + $0x368] sm:$0xff] }
  0x99   :  { %v4333_v46 = vcombine.high %v563_v42, %v567_v9  ;;  %v555_v50 = vld [vmem:[#allocation5 + $0xb80] sm:$0xff]  ;;  %v4332_v54 = vcombine.low %v563_v42, %v567_v9  ;;  %v4062_v33 = vcombine.low %v292_v15, %v296_v16  ;;  %v268_v42 = vld [vmem:[#allocation5 + $0x288] sm:$0xff] }
  0x9a   :  { %2676 = vmatpush1.bf16.msra.mxu0 %v4236_v18  ;;  %v559_v53 = vld [vmem:[#allocation5 + $0xba0] sm:$0xff]  ;;  %v4071_v18 = vcombine.high %v300_v3, %v304_v4 }
  0x9b   :  { %2754 = vmatpush1.bf16.msra.mxu1 %v3998_v19  ;;  %2677 = vmatprep.subr.bf16.mxu0 %v4229_v20  ;;  %v4325_v55 = vcombine.high %v555_v50, %v559_v53  ;;  %v547_v60 = vld [vmem:[#allocation5 + $0xb40] sm:$0xff]  ;;  %v4324_v0 = vcombine.low %v555_v50, %v559_v53  ;;  %v260_v50 = vld [vmem:[#allocation5 + $0x248] sm:$0xff] }
  0x9c   :  { %2755 = vmatprep.subr.bf16.mxu1 %v3991_v26  ;;  %v551_v63 = vld [vmem:[#allocation5 + $0xb60] sm:$0xff]  ;;  %v288_v26 = vld [vmem:[#allocation5 + $0x328] sm:$0xff] }
  0x9d   :  { %v4317_v2 = vcombine.high %v547_v60, %v551_v63  ;;  %v539_v5 = vld [vmem:[#allocation5 + $0xb00] sm:$0xff]  ;;  %v4316_v12 = vcombine.low %v547_v60, %v551_v63  ;;  %v4054_v39 = vcombine.low %v284_v25, %v288_v26  ;;  %v372_v53 = vld [vmem:[#allocation5 + $0x5c8] sm:$0xff] }
  0x9e   :  { %2678 = vmatpush1.bf16.msra.mxu0 %v4228_v28  ;;  %v543_v11 = vld [vmem:[#allocation5 + $0xb20] sm:$0xff]  ;;  %v4063_v28 = vcombine.high %v292_v15, %v296_v16  ;;  %v256_v63 = vld [vmem:[#allocation5 + $0x228] sm:$0xff] }
  0x9f   :  { %2756 = vmatpush1.bf16.msra.mxu1 %v3990_v29  ;;  %2679 = vmatprep.subr.bf16.mxu0 %v4221_v30  ;;  %v4309_v14 = vcombine.high %v539_v5, %v543_v11  ;;  %v531_v17 = vld [vmem:[#allocation5 + $0xac0] sm:$0xff]  ;;  %v4308_v20 = vcombine.low %v539_v5, %v543_v11 }
  0xa0   :  { %2757 = vmatprep.subr.bf16.mxu1 %v3983_v36  ;;  %v535_v19 = vld [vmem:[#allocation5 + $0xae0] sm:$0xff]  ;;  %v280_v36 = vld [vmem:[#allocation5 + $0x2e8] sm:$0xff] }
  0xa1   :  { %v4301_v24 = vcombine.high %v531_v17, %v535_v19  ;;  %v523_v27 = vld [vmem:[#allocation5 + $0xa80] sm:$0xff]  ;;  %v4300_v30 = vcombine.low %v531_v17, %v535_v19  ;;  %v4046_v48 = vcombine.low %v276_v35, %v280_v36  ;;  %v492_v17 = vld [vmem:[#allocation5 + $0x988] sm:$0xff] }
  0xa2   :  { %2680 = vmatpush1.bf16.msra.mxu0 %v4220_v38  ;;  %v527_v29 = vld [vmem:[#allocation5 + $0xaa0] sm:$0xff]  ;;  %v4055_v38 = vcombine.high %v284_v25, %v288_v26 }
  0xa3   :  { %2758 = vmatpush1.bf16.msra.mxu1 %v3982_v7  ;;  %2681 = vmatprep.subr.bf16.mxu0 %v4213_v8  ;;  %v4293_v34 = vcombine.high %v523_v27, %v527_v29  ;;  %v515_v37 = vld [vmem:[#allocation5 + $0xa40] sm:$0xff]  ;;  %v4292_v8 = vcombine.low %v523_v27, %v527_v29  ;;  %v344_v29 = vld [vmem:[#allocation5 + $0x4e8] sm:$0xff] }
  0xa4   :  { %2759 = vmatprep.subr.bf16.mxu1 %v3975_v43  ;;  %v519_v7 = vld [vmem:[#allocation5 + $0xa60] sm:$0xff]  ;;  %v272_v43 = vld [vmem:[#allocation5 + $0x2a8] sm:$0xff] }
  0xa5   :  { %v4285_v41 = vcombine.high %v515_v37, %v519_v7  ;;  %v507_v9 = vld [vmem:[#allocation5 + $0xa00] sm:$0xff]  ;;  %v4038_v59 = vcombine.low %v268_v42, %v272_v43 }
  0xa6   :  { %2682 = vmatpush1.bf16.msra.mxu0 %v4212_v10  ;;  %v4047_v10 = vcombine.high %v276_v35, %v280_v36 }
  0xa7   :  { %2760 = vmatpush1.bf16.msra.mxu1 %v3974_v45  ;;  %2683 = vmatprep.subr.bf16.mxu0 %v4333_v46  ;;  %v511_v45 = vld [vmem:[#allocation5 + $0xa20] sm:$0xff]  ;;  %v4284_v46 = vcombine.low %v515_v37, %v519_v7  ;;  %v336_v7 = vld [vmem:[#allocation5 + $0x4a8] sm:$0xff] }
  0xa8   :  { %2761 = vmatprep.subr.bf16.mxu1 %v3967_v51  ;;  %v4277_v49 = vcombine.high %v507_v9, %v511_v45  ;;  %v264_v51 = vld [vmem:[#allocation5 + $0x268] sm:$0xff]  ;;  %v4276_v57 = vcombine.low %v507_v9, %v511_v45 }
  0xa9   :  { %v4030_v5 = vcombine.low %v260_v50, %v264_v51  ;;  %v328_v45 = vld [vmem:[#allocation5 + $0x468] sm:$0xff] }
  0xaa   :  { %2684 = vmatpush2.bf16.msra.mxu0 %v4332_v54  ;;  %v4039_v54 = vcombine.high %v268_v42, %v272_v43 }
  0xab   :  { %2762 = vmatpush1.bf16.msra.mxu1 %v3966_v58  ;;  %2685 = vmatprep.subr.bf16.mxu0 %v4325_v55  ;;  %v376_v58 = vld [vmem:[#allocation5 + $0x5e8] sm:$0xff]  ;;  %v170_v55 = vcombine.low %v4816_v31, %v4819_v32 }
  0xac   :  { %2763 = vmatprep.subr.bf16.mxu1 %v3959_v61  ;;  %v4143_v60 = vcombine.high %v372_v53, %v376_v58  ;;  %v252_v61 = vld [vmem:[#allocation5 + $0x208] sm:$0xff]  ;;  %v4142_v4 = vcombine.low %v372_v53, %v376_v58 }
  0xad   :  { %v4844_v3 = vpack.c.bf16 %v170_v55, %v170_v55  ;;  %v500_v32 = vld [vmem:[#allocation5 + $0x9c8] sm:$0xff]  ;;  %v4023_v11 = vcombine.high %v252_v61, %v256_v63  ;;  %v4022_v15 = vcombine.low %v252_v61, %v256_v63 }
  0xae   :  { %2686 = vmatpush2.bf16.msra.mxu0 %v4324_v0  ;;  %v364_v0 = vld [vmem:[#allocation5 + $0x588] sm:$0xff] }
  0xaf   :  { %2764 = vmatpush1.bf16.msra.mxu1 %v3958_v1  ;;  %2687 = vmatprep.subr.bf16.mxu0 %v4317_v2  ;;  %v4031_v1 = vcombine.high %v260_v50, %v264_v51  ;;  %v368_v2 = vld [vmem:[#allocation5 + $0x5a8] sm:$0xff] }
  0xb0   :  { %2765 = vmatprep.subr.bf16.mxu1 %v4079_v6  ;;  %v4135_v31 = vcombine.high %v364_v0, %v368_v2  ;;  %v504_v6 = vld [vmem:[#allocation5 + $0x9e8] sm:$0xff] }
  0xb1   :  { %v4271_v19 = vcombine.high %v500_v32, %v504_v6  ;;  %v4270_v25 = vcombine.low %v500_v32, %v504_v6  ;;  %v320_v58 = vld [vmem:[#allocation5 + $0x428] sm:$0xff] }
  0xb2   :  { %2688 = vmatpush2.bf16.msra.mxu0 %v4316_v12  ;;  %v356_v12 = vld [vmem:[#allocation5 + $0x548] sm:$0xff] }
  0xb3   :  { %2766 = vmatpush2.bf16.msra.mxu1 %v4078_v13  ;;  %2689 = vmatprep.subr.bf16.mxu0 %v4309_v14  ;;  %v360_v13 = vld [vmem:[#allocation5 + $0x568] sm:$0xff]  ;;  %v4134_v14 = vcombine.low %v364_v0, %v368_v2 }
  0xb4   :  { %2767 = vmatprep.subr.bf16.mxu1 %v4071_v18  ;;  %v4127_v16 = vcombine.high %v356_v12, %v360_v13  ;;  %v348_v18 = vld [vmem:[#allocation5 + $0x508] sm:$0xff] }
  0xb5   :  { %v460_v55 = vld [vmem:[#allocation5 + $0x888] sm:$0xff] }
  0xb6   :  { %2690 = vmatpush2.bf16.msra.mxu0 %v4308_v20  ;;  %v352_v20 = vld [vmem:[#allocation5 + $0x528] sm:$0xff] }
  0xb7   :  { %2768 = vmatpush2.bf16.msra.mxu1 %v4070_v23  ;;  %2691 = vmatprep.subr.bf16.mxu0 %v4301_v24  ;;  %v496_v23 = vld [vmem:[#allocation5 + $0x9a8] sm:$0xff]  ;;  %v4126_v24 = vcombine.low %v356_v12, %v360_v13  ;;  %v4119_v26 = vcombine.high %v348_v18, %v352_v20 }
  0xb8   :  { %2769 = vmatprep.subr.bf16.mxu1 %v4063_v28  ;;  %v4263_v27 = vcombine.high %v492_v17, %v496_v23  ;;  %v340_v28 = vld [vmem:[#allocation5 + $0x4c8] sm:$0xff]  ;;  %v4262_v35 = vcombine.low %v492_v17, %v496_v23 }
  0xb9   :  { %v4111_v36 = vcombine.high %v340_v28, %v344_v29  ;;  %v436_v0 = vld [vmem:[#allocation5 + $0x7c8] sm:$0xff] }
  0xba   :  { %2692 = vmatpush2.bf16.msra.mxu0 %v4300_v30  ;;  %v484_v30 = vld [vmem:[#allocation5 + $0x948] sm:$0xff] }
  0xbb   :  { %2770 = vmatpush2.bf16.msra.mxu1 %v4062_v33  ;;  %2693 = vmatprep.subr.bf16.mxu0 %v4293_v34  ;;  %v488_v33 = vld [vmem:[#allocation5 + $0x968] sm:$0xff]  ;;  %v4118_v34 = vcombine.low %v348_v18, %v352_v20 }
  0xbc   :  { %2771 = vmatprep.subr.bf16.mxu1 %v4055_v38  ;;  %v4255_v37 = vcombine.high %v484_v30, %v488_v33  ;;  %v332_v38 = vld [vmem:[#allocation5 + $0x488] sm:$0xff]  ;;  %v4254_v42 = vcombine.low %v484_v30, %v488_v33 }
  0xbd   :  { %v4103_v43 = vcombine.high %v332_v38, %v336_v7  ;;  %v452_v2 = vld [vmem:[#allocation5 + $0x848] sm:$0xff] }
  0xbe   :  { %2694 = vmatpush2.bf16.msra.mxu0 %v4292_v8  ;;  %v476_v8 = vld [vmem:[#allocation5 + $0x908] sm:$0xff] }
  0xbf   :  { %2772 = vmatpush2.bf16.msra.mxu1 %v4054_v39  ;;  %2695 = vmatprep.subr.bf16.mxu0 %v4285_v41  ;;  %v480_v39 = vld [vmem:[#allocation5 + $0x928] sm:$0xff]  ;;  %v4110_v41 = vcombine.low %v340_v28, %v344_v29 }
  0xc0   :  { %2773 = vmatprep.subr.bf16.mxu1 %v4047_v10  ;;  %v4247_v9 = vcombine.high %v476_v8, %v480_v39  ;;  %v324_v10 = vld [vmem:[#allocation5 + $0x448] sm:$0xff]  ;;  %v4246_v50 = vcombine.low %v476_v8, %v480_v39 }
  0xc1   :  { %v4095_v51 = vcombine.high %v324_v10, %v328_v45  ;;  %v432_v12 = vld [vmem:[#allocation5 + $0x7a8] sm:$0xff] }
  0xc2   :  { %2696 = vmatpush2.bf16.msra.mxu0 %v4284_v46  ;;  %v468_v46 = vld [vmem:[#allocation5 + $0x8c8] sm:$0xff] }
  0xc3   :  { %2774 = vmatpush2.bf16.msra.mxu1 %v4046_v48  ;;  %2697 = vmatprep.subr.bf16.mxu0 %v4277_v49  ;;  %v472_v48 = vld [vmem:[#allocation5 + $0x8e8] sm:$0xff]  ;;  %v4102_v49 = vcombine.low %v332_v38, %v336_v7 }
  0xc4   :  { %2775 = vmatprep.subr.bf16.mxu1 %v4039_v54  ;;  %v4239_v53 = vcombine.high %v468_v46, %v472_v48  ;;  %v316_v54 = vld [vmem:[#allocation5 + $0x408] sm:$0xff] }
  0xc5   :  { %v4087_v61 = vcombine.high %v316_v54, %v320_v58  ;;  %v444_v13 = vld [vmem:[#allocation5 + $0x808] sm:$0xff] }
  0xc6   :  { %2698 = vmatpush2.bf16.msra.mxu0 %v4276_v57  ;;  %v464_v57 = vld [vmem:[#allocation5 + $0x8a8] sm:$0xff] }
  0xc7   :  { %2776 = vmatpush2.bf16.msra.mxu1 %v4038_v59  ;;  %2790 = vmatprep.subr.bf16.mxu0 %v4143_v60  ;;  %v4094_v59 = vcombine.low %v324_v10, %v328_v45  ;;  %v4238_v60 = vcombine.low %v468_v46, %v472_v48  ;;  %v4231_v63 = vcombine.high %v460_v55, %v464_v57  ;;  %v424_v20 = vld [vmem:[#allocation5 + $0x768] sm:$0xff] }
  0xc8   :  { %2777 = vmatprep.subr.bf16.mxu1 %v4031_v1  ;;  %v440_v1 = vld [vmem:[#allocation5 + $0x7e8] sm:$0xff] }
  0xc9   :  { %2700 = vmatmul.mubr.bf16.vlgmr.msra.gmra.mxu0 %v4844_v3  ;;  %v4207_v32 = vcombine.high %v436_v0, %v440_v1  ;;  %v564_v23 = vld [vmem:[#allocation5 + $0xbc8] sm:$0xff] }
  0xca   :  { %2791 = vmatpush1.bf16.msra.mxu0 %v4142_v4  ;;  %2822 = vmatprep.mubr.bf16.mxu0 %v4809_v22  ;;  %v456_v4 = vld [vmem:[#allocation5 + $0x868] sm:$0xff] }
  0xcb   :  { %2778 = vmatpush2.bf16.msra.mxu1 %v4030_v5  ;;  %2792 = vmatprep.subr.bf16.mxu0 %v4135_v31  ;;  %v4086_v5 = vcombine.low %v316_v54, %v320_v58  ;;  %v4230_v31 = vcombine.low %v460_v55, %v464_v57  ;;  %v4223_v6 = vcombine.high %v452_v2, %v456_v4  ;;  %v412_v29 = vld [vmem:[#allocation5 + $0x708] sm:$0xff] }
  0xcc   :  { %2779 = vmatprep.subr.bf16.mxu1 %v4023_v11  ;;  %v428_v11 = vld [vmem:[#allocation5 + $0x788] sm:$0xff] }
  0xcd   :  { %v4199_v17 = vcombine.high %v428_v11, %v432_v12  ;;  %v416_v30 = vld [vmem:[#allocation5 + $0x728] sm:$0xff] }
  0xce   :  { %2793 = vmatpush1.bf16.msra.mxu0 %v4134_v14  ;;  %v448_v14 = vld [vmem:[#allocation5 + $0x828] sm:$0xff] }
  0xcf   :  { %2780 = vmatpush2.bf16.msra.mxu1 %v4022_v15  ;;  %2794 = vmatprep.subr.bf16.mxu0 %v4127_v16  ;;  %v4206_v15 = vcombine.low %v436_v0, %v440_v1  ;;  %v4222_v16 = vcombine.low %v452_v2, %v456_v4  ;;  %v4215_v18 = vcombine.high %v444_v13, %v448_v14  ;;  %v556_v33 = vld [vmem:[#allocation5 + $0xb88] sm:$0xff] }
  0xd0   :  { %2831 = vmatprep.subr.bf16.mxu1 %v4271_v19  ;;  %v420_v19 = vld [vmem:[#allocation5 + $0x748] sm:$0xff] }
  0xd1   :  { %v404_v7 = vld [vmem:[#allocation5 + $0x6c8] sm:$0xff] }
  0xd2   :  { %2782 = vmatmul.mubr.bf16.vlgmr.msra.gmra.mxu1 %v4823_v40  ;;  %2795 = vmatpush1.bf16.msra.mxu0 %v4126_v24  ;;  %v568_v24 = vld [vmem:[#allocation5 + $0xbe8] sm:$0xff] }
  0xd3   :  { %2832 = vmatpush1.bf16.msra.mxu1 %v4270_v25  ;;  %2796 = vmatprep.subr.bf16.mxu0 %v4119_v26  ;;  %v4198_v25 = vcombine.low %v428_v11, %v432_v12  ;;  %v4214_v26 = vcombine.low %v444_v13, %v448_v14  ;;  %v4335_v28 = vcombine.high %v564_v23, %v568_v24  ;;  %v408_v8 = vld [vmem:[#allocation5 + $0x6e8] sm:$0xff] }
  0xd4   :  { %2833 = vmatprep.subr.bf16.mxu1 %v4263_v27  ;;  %2863 = vmatprep.mubr.bf16.mxu1 %v4832_v52  ;;  %v4191_v27 = vcombine.high %v420_v19, %v424_v20  ;;  %v548_v39 = vld [vmem:[#allocation5 + $0xb48] sm:$0xff] }
  0xd5   :  { %v396_v45 = vld [vmem:[#allocation5 + $0x688] sm:$0xff] }
  0xd6   :  { %2797 = vmatpush1.bf16.msra.mxu0 %v4118_v34  ;;  %v560_v34 = vld [vmem:[#allocation5 + $0xba8] sm:$0xff] }
  0xd7   :  { %2834 = vmatpush1.bf16.msra.mxu1 %v4262_v35  ;;  %2798 = vmatprep.subr.bf16.mxu0 %v4111_v36  ;;  %v4190_v35 = vcombine.low %v420_v19, %v424_v20  ;;  %v4334_v36 = vcombine.low %v564_v23, %v568_v24  ;;  %v4327_v38 = vcombine.high %v556_v33, %v560_v34  ;;  %v400_v46 = vld [vmem:[#allocation5 + $0x6a8] sm:$0xff]  ;;  %v245_v20 = vld [vmem:[#allocation5 + $0x1d0] sm:$0xff] }
  0xd8   :  { %2835 = vmatprep.subr.bf16.mxu1 %v4255_v37  ;;  %v4183_v37 = vcombine.high %v412_v29, %v416_v30  ;;  %v540_v48 = vld [vmem:[#allocation5 + $0xb08] sm:$0xff]  ;;  %v249_v23 = vld [vmem:[#allocation5 + $0x1f0] sm:$0xff] }
  0xd9   :  { %v388_v58 = vld [vmem:[#allocation5 + $0x648] sm:$0xff] }
  0xda   :  { %2799 = vmatpush1.bf16.msra.mxu0 %v4110_v41  ;;  %v552_v41 = vld [vmem:[#allocation5 + $0xb68] sm:$0xff] }
  0xdb   :  { %2836 = vmatpush1.bf16.msra.mxu1 %v4254_v42  ;;  %2800 = vmatprep.subr.bf16.mxu0 %v4103_v43  ;;  %v4182_v42 = vcombine.low %v412_v29, %v416_v30  ;;  %v4326_v43 = vcombine.low %v556_v33, %v560_v34  ;;  %v4319_v10 = vcombine.high %v548_v39, %v552_v41  ;;  %v392_v55 = vld [vmem:[#allocation5 + $0x668] sm:$0xff]  ;;  %v373_v30 = vld [vmem:[#allocation5 + $0x5d0] sm:$0xff] }
  0xdc   :  { %2837 = vmatprep.subr.bf16.mxu1 %v4247_v9  ;;  %v4175_v9 = vcombine.high %v404_v7, %v408_v8  ;;  %v532_v57 = vld [vmem:[#allocation5 + $0xac8] sm:$0xff]  ;;  %v377_v33 = vld [vmem:[#allocation5 + $0x5f0] sm:$0xff] }
  0xdd   :  { %v380_v1 = vld [vmem:[#allocation5 + $0x608] sm:$0xff] }
  0xde   :  { %2801 = vmatpush1.bf16.msra.mxu0 %v4102_v49  ;;  %v544_v49 = vld [vmem:[#allocation5 + $0xb28] sm:$0xff] }
  0xdf   :  { %2838 = vmatpush1.bf16.msra.mxu1 %v4246_v50  ;;  %2802 = vmatprep.subr.bf16.mxu0 %v4095_v51  ;;  %v4174_v50 = vcombine.low %v404_v7, %v408_v8  ;;  %v4318_v51 = vcombine.low %v548_v39, %v552_v41  ;;  %v4311_v54 = vcombine.high %v540_v48, %v544_v49  ;;  %v384_v2 = vld [vmem:[#allocation5 + $0x628] sm:$0xff]  ;;  %v369_v7 = vld [vmem:[#allocation5 + $0x5b0] sm:$0xff] }
  0xe0   :  { %2839 = vmatprep.subr.bf16.mxu1 %v4239_v53  ;;  %v4167_v53 = vcombine.high %v396_v45, %v400_v46  ;;  %v524_v4 = vld [vmem:[#allocation5 + $0xa88] sm:$0xff]  ;;  %v4016_v8 = vcombine.low %v245_v20, %v249_v23  ;;  %v4144_v39 = vcombine.low %v373_v30, %v377_v33 }
  0xe1   :  { %v572_v12 = vld [vmem:[#allocation5 + $0xc08] sm:$0xff] }
  0xe2   :  { %2803 = vmatpush1.bf16.msra.mxu0 %v4094_v59  ;;  %v536_v59 = vld [vmem:[#allocation5 + $0xae8] sm:$0xff] }
  0xe3   :  { %2840 = vmatpush1.bf16.msra.mxu1 %v4238_v60  ;;  %2804 = vmatprep.subr.bf16.mxu0 %v4087_v61  ;;  %v4166_v60 = vcombine.low %v396_v45, %v400_v46  ;;  %v4310_v61 = vcombine.low %v540_v48, %v544_v49  ;;  %v4303_v0 = vcombine.high %v532_v57, %v536_v59  ;;  %v576_v13 = vld [vmem:[#allocation5 + $0xc28] sm:$0xff]  ;;  %v361_v45 = vld [vmem:[#allocation5 + $0x570] sm:$0xff] }
  0xe4   :  { %2841 = vmatprep.subr.bf16.mxu1 %v4231_v63  ;;  %v4159_v63 = vcombine.high %v388_v58, %v392_v55  ;;  %v516_v14 = vld [vmem:[#allocation5 + $0xa48] sm:$0xff] }
  0xe5   :  { %v508_v24 = vld [vmem:[#allocation5 + $0xa08] sm:$0xff] }
  0xe6   :  { %2805 = vmatpush1.bf16.msra.mxu0 %v4086_v5  ;;  %v528_v5 = vld [vmem:[#allocation5 + $0xaa8] sm:$0xff] }
  0xe7   :  { %2842 = vmatpush1.bf16.msra.mxu1 %v4230_v31  ;;  %2806 = vmatprep.subr.bf16.mxu0 %v4207_v32  ;;  %v4158_v31 = vcombine.low %v388_v58, %v392_v55  ;;  %v4302_v32 = vcombine.low %v532_v57, %v536_v59  ;;  %v4295_v11 = vcombine.high %v524_v4, %v528_v5  ;;  %v353_v58 = vld [vmem:[#allocation5 + $0x530] sm:$0xff] }
  0xe8   :  { %2843 = vmatprep.subr.bf16.mxu1 %v4223_v6  ;;  %v4151_v6 = vcombine.high %v380_v1, %v384_v2 }
  0xea   :  { %2807 = vmatpush2.bf16.msra.mxu0 %v4206_v15  ;;  %v520_v15 = vld [vmem:[#allocation5 + $0xa68] sm:$0xff] }
  0xeb   :  { %2844 = vmatpush1.bf16.msra.mxu1 %v4222_v16  ;;  %2808 = vmatprep.subr.bf16.mxu0 %v4199_v17  ;;  %v4150_v16 = vcombine.low %v380_v1, %v384_v2  ;;  %v4294_v17 = vcombine.low %v524_v4, %v528_v5  ;;  %v4287_v19 = vcombine.high %v516_v14, %v520_v15  ;;  %v345_v1 = vld [vmem:[#allocation5 + $0x4f0] sm:$0xff] }
  0xec   :  { %2845 = vmatprep.subr.bf16.mxu1 %v4215_v18  ;;  %v4343_v18 = vcombine.high %v572_v12, %v576_v13 }
  0xee   :  { %2809 = vmatpush2.bf16.msra.mxu0 %v4198_v25  ;;  %v512_v25 = vld [vmem:[#allocation5 + $0xa28] sm:$0xff] }
  0xef   :  { %2846 = vmatpush1.bf16.msra.mxu1 %v4214_v26  ;;  %2810 = vmatprep.subr.bf16.mxu0 %v4191_v27  ;;  %v4342_v26 = vcombine.low %v572_v12, %v576_v13  ;;  %v4286_v27 = vcombine.low %v516_v14, %v520_v15  ;;  %v4279_v29 = vcombine.high %v508_v24, %v512_v25  ;;  %v337_v12 = vld [vmem:[#allocation5 + $0x4b0] sm:$0xff] }
  0xf0   :  { %2847 = vmatprep.subr.bf16.mxu1 %v4335_v28  ;;  %v4017_v28 = vcombine.high %v245_v20, %v249_v23  ;;  %v4278_v34 = vcombine.low %v508_v24, %v512_v25  ;;  %v329_v20 = vld [vmem:[#allocation5 + $0x470] sm:$0xff] }
  0xf2   :  { %2811 = vmatpush2.bf16.msra.mxu0 %v4190_v35  ;;  %v4145_v35 = vcombine.high %v373_v30, %v377_v33  ;;  %v321_v30 = vld [vmem:[#allocation5 + $0x430] sm:$0xff] }
  0xf3   :  { %2848 = vmatpush2.bf16.msra.mxu1 %v4334_v36  ;;  %2812 = vmatprep.subr.bf16.mxu0 %v4183_v37  ;;  %v237_v36 = vld [vmem:[#allocation5 + $0x190] sm:$0xff] }
  0xf4   :  { %2849 = vmatprep.subr.bf16.mxu1 %v4327_v38  ;;  %v241_v37 = vld [vmem:[#allocation5 + $0x1b0] sm:$0xff] }
  0xf5   :  { %v365_v38 = vld [vmem:[#allocation5 + $0x590] sm:$0xff]  ;;  %v4009_v41 = vcombine.high %v237_v36, %v241_v37  ;;  %v4008_v46 = vcombine.low %v237_v36, %v241_v37 }
  0xf6   :  { %2813 = vmatpush2.bf16.msra.mxu0 %v4182_v42  ;;  %v4137_v42 = vcombine.high %v365_v38, %v369_v7  ;;  %v4136_v48 = vcombine.low %v365_v38, %v369_v7  ;;  %v309_v37 = vld [vmem:[#allocation5 + $0x3d0] sm:$0xff] }
  0xf7   :  { %2850 = vmatpush2.bf16.msra.mxu1 %v4326_v43  ;;  %2814 = vmatprep.subr.bf16.mxu0 %v4175_v9  ;;  %v229_v43 = vld [vmem:[#allocation5 + $0x150] sm:$0xff] }
  0xf8   :  { %2851 = vmatprep.subr.bf16.mxu1 %v4319_v10  ;;  %v233_v9 = vld [vmem:[#allocation5 + $0x170] sm:$0xff] }
  0xf9   :  { %v357_v10 = vld [vmem:[#allocation5 + $0x550] sm:$0xff]  ;;  %v4001_v49 = vcombine.high %v229_v43, %v233_v9  ;;  %v4000_v55 = vcombine.low %v229_v43, %v233_v9 }
  0xfa   :  { %2815 = vmatpush2.bf16.msra.mxu0 %v4174_v50  ;;  %v4129_v50 = vcombine.high %v357_v10, %v361_v45  ;;  %v4128_v57 = vcombine.low %v357_v10, %v361_v45  ;;  %v313_v38 = vld [vmem:[#allocation5 + $0x3f0] sm:$0xff] }
  0xfb   :  { %2852 = vmatpush2.bf16.msra.mxu1 %v4318_v51  ;;  %2816 = vmatprep.subr.bf16.mxu0 %v4167_v53  ;;  %v221_v51 = vld [vmem:[#allocation5 + $0x110] sm:$0xff] }
  0xfc   :  { %2853 = vmatprep.subr.bf16.mxu1 %v4311_v54  ;;  %v225_v53 = vld [vmem:[#allocation5 + $0x130] sm:$0xff] }
  0xfd   :  { %v349_v54 = vld [vmem:[#allocation5 + $0x510] sm:$0xff]  ;;  %v3993_v59 = vcombine.high %v221_v51, %v225_v53  ;;  %v3992_v2 = vcombine.low %v221_v51, %v225_v53 }
  0xfe   :  { %2817 = vmatpush2.bf16.msra.mxu0 %v4166_v60  ;;  %v4121_v60 = vcombine.high %v349_v54, %v353_v58  ;;  %v4120_v4 = vcombine.low %v349_v54, %v353_v58  ;;  %v437_v7 = vld [vmem:[#allocation5 + $0x7d0] sm:$0xff] }
  0xff   :  { %2854 = vmatpush2.bf16.msra.mxu1 %v4310_v61  ;;  %2818 = vmatprep.subr.bf16.mxu0 %v4159_v63  ;;  %v213_v61 = vld [vmem:[#allocation5 + $0xd0] sm:$0xff] }
 0x100   :  { %2855 = vmatprep.subr.bf16.mxu1 %v4303_v0  ;;  %v217_v63 = vld [vmem:[#allocation5 + $0xf0] sm:$0xff] }
 0x101   :  { %v341_v0 = vld [vmem:[#allocation5 + $0x4d0] sm:$0xff]  ;;  %v3985_v5 = vcombine.high %v213_v61, %v217_v63  ;;  %v3984_v13 = vcombine.low %v213_v61, %v217_v63 }
 0x102   :  { %2819 = vmatpush2.bf16.msra.mxu0 %v4158_v31  ;;  %v4113_v31 = vcombine.high %v341_v0, %v345_v1  ;;  %v4112_v14 = vcombine.low %v341_v0, %v345_v1  ;;  %v301_v9 = vld [vmem:[#allocation5 + $0x390] sm:$0xff] }
 0x103   :  { %2856 = vmatpush2.bf16.msra.mxu1 %v4302_v32  ;;  %2820 = vmatprep.subr.bf16.mxu0 %v4151_v6  ;;  %v205_v32 = vld [vmem:[#allocation5 + $0x90] sm:$0xff] }
 0x104   :  { %2857 = vmatprep.subr.bf16.mxu1 %v4295_v11  ;;  %v209_v6 = vld [vmem:[#allocation5 + $0xb0] sm:$0xff] }
 0x105   :  { %v333_v11 = vld [vmem:[#allocation5 + $0x490] sm:$0xff]  ;;  %v3977_v15 = vcombine.high %v205_v32, %v209_v6  ;;  %v3976_v23 = vcombine.low %v205_v32, %v209_v6 }
 0x106   :  { %2821 = vmatpush2.bf16.msra.mxu0 %v4150_v16  ;;  %v4105_v16 = vcombine.high %v333_v11, %v337_v12  ;;  %v4104_v24 = vcombine.low %v333_v11, %v337_v12  ;;  %v305_v10 = vld [vmem:[#allocation5 + $0x3b0] sm:$0xff] }
 0x107   :  { %2858 = vmatpush2.bf16.msra.mxu1 %v4294_v17  ;;  %2886 = vmatprep.subr.bf16.mxu0 %v4343_v18  ;;  %v197_v17 = vld [vmem:[#allocation5 + $0x50] sm:$0xff] }
 0x108   :  { %2859 = vmatprep.subr.bf16.mxu1 %v4287_v19  ;;  %v201_v18 = vld [vmem:[#allocation5 + $0x70] sm:$0xff] }
 0x109   :  { %2823 = vmatmul.mubr.bf16.vlgmr.msra.gmra.mxu0 %v4827_v44  ;;  %v325_v19 = vld [vmem:[#allocation5 + $0x450] sm:$0xff]  ;;  %v3969_v25 = vcombine.high %v197_v17, %v201_v18  ;;  %v3968_v33 = vcombine.low %v197_v17, %v201_v18 }
 0x10a   :  { %2887 = vmatpush1.bf16.msra.mxu0 %v4342_v26  ;;  %2904 = vmatprep.mubr.bf16.mxu0 %v4737_v56  ;;  %v4097_v26 = vcombine.high %v325_v19, %v329_v20  ;;  %v429_v45 = vld [vmem:[#allocation5 + $0x790] sm:$0xff] }
 0x10b   :  { %2860 = vmatpush2.bf16.msra.mxu1 %v4286_v27  ;;  %2913 = vmatprep.subr.bf16.mxu0 %v4017_v28  ;;  %v189_v27 = vld [vmem:[#allocation5 + $0x10] sm:$0xff] }
 0x10c   :  { %2861 = vmatprep.subr.bf16.mxu1 %v4279_v29  ;;  %v193_v28 = vld [vmem:[#allocation5 + $0x30] sm:$0xff] }
 0x10d   :  { %v317_v29 = vld [vmem:[#allocation5 + $0x410] sm:$0xff] }
 0x10e   :  { %v4089_v36 = vcombine.high %v317_v29, %v321_v30  ;;  %v293_v53 = vld [vmem:[#allocation5 + $0x350] sm:$0xff] }
 0x10f   :  { %2862 = vmatpush2.bf16.msra.mxu1 %v4278_v34  ;;  %v4096_v34 = vcombine.low %v325_v19, %v329_v20  ;;  %v297_v54 = vld [vmem:[#allocation5 + $0x370] sm:$0xff] }
 0x110   :  { %2954 = vmatprep.subr.bf16.mxu1 %v4145_v35  ;;  %v3961_v35 = vcombine.high %v189_v27, %v193_v28  ;;  %v421_v58 = vld [vmem:[#allocation5 + $0x750] sm:$0xff] }
 0x111   :  { %4349 = vmatmul.mubr.msk.bf16.vlgmr.msra.gmra.mxu0 %vm2581_vm0, %v4837_v62  ;;  %v285_v63 = vld [vmem:[#allocation5 + $0x310] sm:$0xff] }
 0x112   :  { %2864 = vmatmul.mubr.bf16.vlgmr.msra.gmra.mxu1 %v4844_v3  ;;  %2914 = vmatpush1.bf16.msra.mxu0 %v4016_v8  ;;  %v441_v8 = vld [vmem:[#allocation5 + $0x7f0] sm:$0xff] }
 0x113   :  { %2955 = vmatpush1.bf16.msra.mxu1 %v4144_v39  ;;  %2915 = vmatprep.subr.bf16.mxu0 %v4009_v41  ;;  %v3960_v39 = vcombine.low %v189_v27, %v193_v28  ;;  %v4088_v41 = vcombine.low %v317_v29, %v321_v30  ;;  %v4209_v43 = vcombine.high %v437_v7, %v441_v8  ;;  %v289_v0 = vld [vmem:[#allocation5 + $0x330] sm:$0xff] }
 0x114   :  { %2956 = vmatprep.subr.bf16.mxu1 %v4137_v42  ;;  %2945 = vmatprep.mubr.bf16.mxu0 %v4807_v21  ;;  %v4081_v42 = vcombine.high %v309_v37, %v313_v38  ;;  %v413_v1 = vld [vmem:[#allocation5 + $0x710] sm:$0xff] }
 0x115   :  { %2986 = vmatprep.mubr.bf16.mxu1 %v4809_v22  ;;  %v277_v6 = vld [vmem:[#allocation5 + $0x2d0] sm:$0xff] }
 0x116   :  { %2916 = vmatpush1.bf16.msra.mxu0 %v4008_v46  ;;  %v433_v46 = vld [vmem:[#allocation5 + $0x7b0] sm:$0xff] }
 0x117   :  { %2957 = vmatpush1.bf16.msra.mxu1 %v4136_v48  ;;  %2917 = vmatprep.subr.bf16.mxu0 %v4001_v49  ;;  %v4080_v48 = vcombine.low %v309_v37, %v313_v38  ;;  %v4208_v49 = vcombine.low %v437_v7, %v441_v8  ;;  %v4201_v51 = vcombine.high %v429_v45, %v433_v46  ;;  %v281_v11 = vld [vmem:[#allocation5 + $0x2f0] sm:$0xff]  ;;  %v4858_v38 = vld [vmem:[#allocation7] sm:$0xff]  ;;  %v587_v8 = vsub.s32 1, %v4786_v47 }
 0x118   :  { %2958 = vmatprep.subr.bf16.mxu1 %v4129_v50  ;;  %v4073_v50 = vcombine.high %v301_v9, %v305_v10  ;;  %v405_v12 = vld [vmem:[#allocation5 + $0x6d0] sm:$0xff] }
 0x119   :  { %v269_v18 = vld [vmem:[#allocation5 + $0x290] sm:$0xff] }
 0x11a   :  { %2918 = vmatpush1.bf16.msra.mxu0 %v4000_v55  ;;  %v425_v55 = vld [vmem:[#allocation5 + $0x770] sm:$0xff] }
 0x11b   :  { %2959 = vmatpush1.bf16.msra.mxu1 %v4128_v57  ;;  %2919 = vmatprep.subr.bf16.mxu0 %v3993_v59  ;;  %v4072_v57 = vcombine.low %v301_v9, %v305_v10  ;;  %v4200_v59 = vcombine.low %v429_v45, %v433_v46  ;;  %v4193_v61 = vcombine.high %v421_v58, %v425_v55  ;;  %v273_v19 = vld [vmem:[#allocation5 + $0x2b0] sm:$0xff] }
 0x11c   :  { %2960 = vmatprep.subr.bf16.mxu1 %v4121_v60  ;;  %v4065_v60 = vcombine.high %v293_v53, %v297_v54  ;;  %v397_v20 = vld [vmem:[#allocation5 + $0x690] sm:$0xff] }
 0x11d   :  { %v261_v28 = vld [vmem:[#allocation5 + $0x250] sm:$0xff] }
 0x11e   :  { %2920 = vmatpush1.bf16.msra.mxu0 %v3992_v2  ;;  %v417_v2 = vld [vmem:[#allocation5 + $0x730] sm:$0xff] }
 0x11f   :  { %2961 = vmatpush1.bf16.msra.mxu1 %v4120_v4  ;;  %2921 = vmatprep.subr.bf16.mxu0 %v3985_v5  ;;  %v4064_v4 = vcombine.low %v293_v53, %v297_v54  ;;  %v4192_v5 = vcombine.low %v421_v58, %v425_v55  ;;  %v4185_v32 = vcombine.high %v413_v1, %v417_v2  ;;  %v265_v29 = vld [vmem:[#allocation5 + $0x270] sm:$0xff] }
 0x120   :  { %2962 = vmatprep.subr.bf16.mxu1 %v4113_v31  ;;  %v4057_v31 = vcombine.high %v285_v63, %v289_v0  ;;  %v389_v30 = vld [vmem:[#allocation5 + $0x650] sm:$0xff]  ;;  %v4033_v37 = vcombine.high %v261_v28, %v265_v29  ;;  %v4032_v9 = vcombine.low %v261_v28, %v265_v29 }
 0x121   :  { %v573_v54 = vld [vmem:[#allocation5 + $0xc10] sm:$0xff] }
 0x122   :  { %2922 = vmatpush1.bf16.msra.mxu0 %v3984_v13  ;;  %v409_v13 = vld [vmem:[#allocation5 + $0x6f0] sm:$0xff] }
 0x123   :  { %2963 = vmatpush1.bf16.msra.mxu1 %v4112_v14  ;;  %2923 = vmatprep.subr.bf16.mxu0 %v3977_v15  ;;  %v4056_v14 = vcombine.low %v285_v63, %v289_v0  ;;  %v4184_v15 = vcombine.low %v413_v1, %v417_v2  ;;  %v4177_v17 = vcombine.high %v405_v12, %v409_v13  ;;  %v577_v58 = vld [vmem:[#allocation5 + $0xc30] sm:$0xff] }
 0x124   :  { %2964 = vmatprep.subr.bf16.mxu1 %v4105_v16  ;;  %v4049_v16 = vcombine.high %v277_v6, %v281_v11  ;;  %v477_v28 = vld [vmem:[#allocation5 + $0x910] sm:$0xff] }
 0x125   :  { %v481_v29 = vld [vmem:[#allocation5 + $0x930] sm:$0xff] }
 0x126   :  { %2924 = vmatpush1.bf16.msra.mxu0 %v3976_v23  ;;  %v401_v23 = vld [vmem:[#allocation5 + $0x6b0] sm:$0xff] }
 0x127   :  { %2965 = vmatpush1.bf16.msra.mxu1 %v4104_v24  ;;  %2925 = vmatprep.subr.bf16.mxu0 %v3969_v25  ;;  %v4048_v24 = vcombine.low %v277_v6, %v281_v11  ;;  %v4176_v25 = vcombine.low %v405_v12, %v409_v13  ;;  %v4169_v27 = vcombine.high %v397_v20, %v401_v23  ;;  %v246_v6 = vld [vmem:[#allocation5 + $0x1d8] sm:$0xff] }
 0x128   :  { %2966 = vmatprep.subr.bf16.mxu1 %v4097_v26  ;;  %v4041_v26 = vcombine.high %v269_v18, %v273_v19  ;;  %v250_v11 = vld [vmem:[#allocation5 + $0x1f8] sm:$0xff] }
 0x12a   :  { %2926 = vmatpush1.bf16.msra.mxu0 %v3968_v33  ;;  %v393_v33 = vld [vmem:[#allocation5 + $0x670] sm:$0xff] }
 0x12b   :  { %2967 = vmatpush1.bf16.msra.mxu1 %v4096_v34  ;;  %2927 = vmatprep.subr.bf16.mxu0 %v3961_v35  ;;  %v4040_v34 = vcombine.low %v269_v18, %v273_v19  ;;  %v583_v35 = vsub.s32 0, %v4786_v47  ;;  %v4161_v7 = vcombine.high %v389_v30, %v393_v33  ;;  %v4160_v45 = vcombine.low %v389_v30, %v393_v33  ;;  %v238_v30 = vld [vmem:[#allocation5 + $0x198] sm:$0xff] }
 0x12c   :  { %2968 = vmatprep.subr.bf16.mxu1 %v4089_v36  ;;  %v4168_v36 = vcombine.low %v397_v20, %v401_v23  ;;  %v4019_v19 = vcombine.high %v246_v6, %v250_v11  ;;  %v485_v20 = vld [vmem:[#allocation5 + $0x950] sm:$0xff]  ;;  %v242_v33 = vld [vmem:[#allocation5 + $0x1b8] sm:$0xff] }
 0x12d   :  { %v584_v10 = vrot.slane %v4858_v38, %v583_v35  ;;  %v489_v23 = vld [vmem:[#allocation5 + $0x970] sm:$0xff] }
 0x12e   :  { %2928 = vmatpush1.bf16.msra.mxu0 %v3960_v39  ;;  %v253_v39 = vld [vmem:[#allocation5 + $0x210] sm:$0xff]  ;;  %v4256_v35 = vcombine.low %v485_v20, %v489_v23 }
 0x12f   :  { %2969 = vmatpush1.bf16.msra.mxu1 %v4088_v41  ;;  %2929 = vmatprep.subr.bf16.mxu0 %v4081_v42  ;;  %v257_v41 = vld [vmem:[#allocation5 + $0x230] sm:$0xff] }
 0x130   :  { %2970 = vmatprep.subr.bf16.mxu1 %v4209_v43  ;;  %v381_v42 = vld [vmem:[#allocation5 + $0x610] sm:$0xff]  ;;  %v4025_v46 = vcombine.high %v253_v39, %v257_v41 }
 0x131   :  { %v385_v43 = vld [vmem:[#allocation5 + $0x630] sm:$0xff] }
 0x132   :  { %2930 = vmatpush2.bf16.msra.mxu0 %v4080_v48  ;;  %v588_v48 = vrot.slane %v4858_v38, %v587_v8  ;;  %v4011_v8 = vcombine.high %v238_v30, %v242_v33 }
 0x133   :  { %2971 = vmatpush2.bf16.msra.mxu1 %v4208_v49  ;;  %2931 = vmatprep.subr.bf16.mxu0 %v4073_v50  ;;  %v4153_v49 = vcombine.high %v381_v42, %v385_v43  ;;  %v501_v50 = vld [vmem:[#allocation5 + $0x9d0] sm:$0xff] }
 0x134   :  { %2972 = vmatprep.subr.bf16.mxu1 %v4201_v51  ;;  %v505_v51 = vld [vmem:[#allocation5 + $0x9f0] sm:$0xff] }
 0x135   :  { %v4273_v63 = vcombine.high %v501_v50, %v505_v51 }
 0x136   :  { %2932 = vmatpush2.bf16.msra.mxu0 %v4072_v57 }
 0x137   :  { %2973 = vmatpush2.bf16.msra.mxu1 %v4200_v59  ;;  %2933 = vmatprep.subr.bf16.mxu0 %v4065_v60  ;;  %v4024_v59 = vcombine.low %v253_v39, %v257_v41  ;;  %v469_v39 = vld [vmem:[#allocation5 + $0x8d0] sm:$0xff] }
 0x138   :  { %2974 = vmatprep.subr.bf16.mxu1 %v4193_v61  ;;  %v4152_v61 = vcombine.low %v381_v42, %v385_v43  ;;  %v473_v41 = vld [vmem:[#allocation5 + $0x8f0] sm:$0xff]  ;;  %v230_v42 = vld [vmem:[#allocation5 + $0x158] sm:$0xff] }
 0x139   :  { %v234_v43 = vld [vmem:[#allocation5 + $0x178] sm:$0xff] }
 0x13a   :  { %2934 = vmatpush2.bf16.msra.mxu0 %v4064_v4  ;;  %v4345_v4 = vcombine.high %v573_v54, %v577_v58 }
 0x13b   :  { %2975 = vmatpush2.bf16.msra.mxu1 %v4192_v5  ;;  %2935 = vmatprep.subr.bf16.mxu0 %v4057_v31  ;;  %v493_v5 = vld [vmem:[#allocation5 + $0x990] sm:$0xff] }
 0x13c   :  { %2976 = vmatprep.subr.bf16.mxu1 %v4185_v32  ;;  %v497_v31 = vld [vmem:[#allocation5 + $0x9b0] sm:$0xff] }
 0x13e   :  { %2936 = vmatpush2.bf16.msra.mxu0 %v4056_v14  ;;  %v4272_v14 = vcombine.low %v501_v50, %v505_v51  ;;  %v222_v50 = vld [vmem:[#allocation5 + $0x118] sm:$0xff] }
 0x13f   :  { %2977 = vmatpush2.bf16.msra.mxu1 %v4184_v15  ;;  %2937 = vmatprep.subr.bf16.mxu0 %v4049_v16  ;;  %v4344_v16 = vcombine.low %v573_v54, %v577_v58  ;;  %v226_v51 = vld [vmem:[#allocation5 + $0x138] sm:$0xff]  ;;  %v4002_v54 = vcombine.low %v230_v42, %v234_v43 }
 0x140   :  { %2978 = vmatprep.subr.bf16.mxu1 %v4177_v17  ;;  %v4265_v17 = vcombine.high %v493_v5, %v497_v31 }
 0x142   :  { %2938 = vmatpush2.bf16.msra.mxu0 %v4048_v24 }
 0x143   :  { %2979 = vmatpush2.bf16.msra.mxu1 %v4176_v25  ;;  %2939 = vmatprep.subr.bf16.mxu0 %v4041_v26  ;;  %v4264_v25 = vcombine.low %v493_v5, %v497_v31  ;;  %v4257_v26 = vcombine.high %v485_v20, %v489_v23  ;;  %v449_v5 = vld [vmem:[#allocation5 + $0x830] sm:$0xff]  ;;  %v206_v31 = vld [vmem:[#allocation5 + $0x98] sm:$0xff] }
 0x144   :  { %2980 = vmatprep.subr.bf16.mxu1 %v4169_v27 }
 0x146   :  { %2940 = vmatpush2.bf16.msra.mxu0 %v4040_v34 }
 0x147   :  { %2981 = vmatpush2.bf16.msra.mxu1 %v4168_v36  ;;  %2941 = vmatprep.subr.bf16.mxu0 %v4033_v37  ;;  %v4018_v36 = vcombine.low %v246_v6, %v250_v11  ;;  %v4249_v37 = vcombine.high %v477_v28, %v481_v29 }
 0x148   :  { %2982 = vmatprep.subr.bf16.mxu1 %v4161_v7  ;;  %v2619_v53 = vpop.f32.mrf.mxu0 }
 0x149   :  { %v2620_v55 = vadd.f32 %v2619_v53, %v584_v10  ;;  %v4010_v10 = vcombine.low %v238_v30, %v242_v33  ;;  %v4240_v53 = vcombine.low %v469_v39, %v473_v41  ;;  %v194_v30 = vld [vmem:[#allocation5 + $0x38] sm:$0xff] }
 0x14a   :  { %v2660_v57 = vpop.f32.mrf.mxu1  ;;  %2942 = vmatpush2.bf16.msra.mxu0 %v4032_v9  ;;  %v2621_v60 = vpop.f32.mrf.mxu0  ;;  %v4248_v9 = vcombine.low %v477_v28, %v481_v29  ;;  %v561_v28 = vld [vmem:[#allocation5 + $0xbb0] sm:$0xff]  ;;  %v190_v29 = vld [vmem:[#allocation5 + $0x18] sm:$0xff] }
 0x14b   :  { %2983 = vmatpush2.bf16.msra.mxu1 %v4160_v45  ;;  %2943 = vmatprep.subr.bf16.mxu0 %v4025_v46  ;;  %v4863_v0 = vadd.f32 %v2660_v57, %v2620_v55  ;;  %v2622_v1 = vadd.f32 %v2621_v60, %v588_v48  ;;  %v4241_v45 = vcombine.high %v469_v39, %v473_v41  ;;  %v461_v48 = vld [vmem:[#allocation5 + $0x890] sm:$0xff]  ;;  %v214_v60 = vld [vmem:[#allocation5 + $0xd8] sm:$0xff] }
 0x14c   :  { %v2662_v2 = vpop.f32.mrf.mxu1  ;;  %2984 = vmatprep.subr.bf16.mxu1 %v4153_v49  ;;  %v2623_v32 = vpop.f32.mrf.mxu0  ;;  %v4003_v46 = vcombine.high %v230_v42, %v234_v43  ;;  %v465_v49 = vld [vmem:[#allocation5 + $0x8b0] sm:$0xff]  ;;  %v3995_v55 = vcombine.high %v222_v50, %v226_v51  ;;  %v314_v39 = vld [vmem:[#allocation5 + $0x3f8] sm:$0xff]  ;;  %v3962_v42 = vcombine.low %v190_v29, %v194_v30 }
 0x14d   :  { %v4865_v12 = vadd.f32 %v2662_v2, %v2622_v1  ;;  %v4233_v58 = vcombine.high %v461_v48, %v465_v49  ;;  %v453_v57 = vld [vmem:[#allocation5 + $0x850] sm:$0xff]  ;;  %v3994_v1 = vcombine.low %v222_v50, %v226_v51  ;;  %v210_v32 = vld [vmem:[#allocation5 + $0xb8] sm:$0xff] }
 0x14e   :  { %v2664_v13 = vpop.f32.mrf.mxu1  ;;  %2944 = vmatpush2.bf16.msra.mxu0 %v4024_v59  ;;  %v2624_v15 = vpop.f32.mrf.mxu0  ;;  %v457_v59 = vld [vmem:[#allocation5 + $0x870] sm:$0xff]  ;;  %v3978_v20 = vcombine.low %v206_v31, %v210_v32 }
 0x14f   :  { %2985 = vmatpush2.bf16.msra.mxu1 %v4152_v61  ;;  %2995 = vmatprep.subr.bf16.mxu0 %v4273_v63  ;;  %v218_v61 = vld [vmem:[#allocation5 + $0xf8] sm:$0xff]  ;;  %v4232_v63 = vcombine.low %v461_v48, %v465_v49  ;;  %v4224_v6 = vcombine.low %v453_v57, %v457_v59  ;;  %v565_v15 = vld [vmem:[#allocation5 + $0xbd0] sm:$0xff] }
 0x150   :  { %v2665_v18 = vpop.f32.mrf.mxu1  ;;  %3050 = vmatprep.subr.bf16.mxu1 %v4345_v4  ;;  %v3987_v2 = vcombine.high %v214_v60, %v218_v61  ;;  %v445_v4 = vld [vmem:[#allocation5 + $0x810] sm:$0xff]  ;;  %v3986_v11 = vcombine.low %v214_v60, %v218_v61  ;;  %v306_v48 = vld [vmem:[#allocation5 + $0x3b8] sm:$0xff] }
 0x151   :  { %2946 = vmatmul.mubr.bf16.vlgmr.msra.gmra.mxu0 %v4823_v40  ;;  %v4217_v13 = vcombine.high %v445_v4, %v449_v5  ;;  %v202_v18 = vld [vmem:[#allocation5 + $0x78] sm:$0xff] }
 0x152   :  { %2987 = vmatmul.mubr.bf16.vlgmr.msra.gmra.mxu1 %v4827_v44  ;;  %v4869_v24 = vpop.f32.mrf.mxu1  ;;  %2996 = vmatpush1.bf16.msra.mxu0 %v4272_v14  ;;  %v3979_v14 = vcombine.high %v206_v31, %v210_v32 }
 0x153   :  { %3051 = vmatpush1.bf16.msra.mxu1 %v4344_v16  ;;  %2997 = vmatprep.subr.bf16.mxu0 %v4265_v17  ;;  %v569_v16 = vld [vmem:[#allocation5 + $0xbf0] sm:$0xff]  ;;  %v198_v17 = vld [vmem:[#allocation5 + $0x58] sm:$0xff] }
 0x154   :  { %v4871_v27 = vpop.f32.mrf.mxu1  ;;  %3068 = vmatprep.mubr.bf16.mxu1 %v4737_v56  ;;  %3077 = vmatprep.subr.bf16.mxu1 %v4019_v19  ;;  %v4216_v19 = vcombine.low %v445_v4, %v449_v5  ;;  %v4337_v23 = vcombine.high %v565_v15, %v569_v16  ;;  %v4336_v33 = vcombine.low %v565_v15, %v569_v16  ;;  %v290_v4 = vld [vmem:[#allocation5 + $0x338] sm:$0xff] }
 0x155   :  { %3027 = vmatprep.mubr.bf16.mxu0 %v4832_v52  ;;  %v282_v15 = vld [vmem:[#allocation5 + $0x2f8] sm:$0xff] }
 0x156   :  { %v2746_v34 = vpop.f32.mrf.mxu1  ;;  %2998 = vmatpush1.bf16.msra.mxu0 %v4264_v25  ;;  %v3971_v25 = vcombine.high %v198_v17, %v202_v18 }
 0x157   :  { %2999 = vmatprep.subr.bf16.mxu0 %v4257_v26  ;;  %v557_v26 = vld [vmem:[#allocation5 + $0xb90] sm:$0xff]  ;;  %v3970_v34 = vcombine.low %v198_v17, %v202_v18 }
 0x158   :  { %v2747_v7 = vpop.f32.mrf.mxu1  ;;  %v4328_v41 = vcombine.low %v557_v26, %v561_v28 }
 0x159   :  { %v553_v7 = vld [vmem:[#allocation5 + $0xb70] sm:$0xff] }
 0x15a   :  { %4350 = vmatmul.mubr.msk.bf16.vlgmr.msra.gmra.mxu1 %vm2581_vm0, %v4837_v62  ;;  %3000 = vmatpush1.bf16.msra.mxu0 %v4256_v35  ;;  %v4329_v35 = vcombine.high %v557_v26, %v561_v28  ;;  %v274_v26 = vld [vmem:[#allocation5 + $0x2b8] sm:$0xff] }
 0x15b   :  { %3078 = vmatpush1.bf16.msra.mxu1 %v4018_v36  ;;  %3001 = vmatprep.subr.bf16.mxu0 %v4249_v37  ;;  %v3963_v36 = vcombine.high %v190_v29, %v194_v30  ;;  %v549_v37 = vld [vmem:[#allocation5 + $0xb50] sm:$0xff] }
 0x15c   :  { %3079 = vmatprep.subr.bf16.mxu1 %v4011_v8  ;;  %3109 = vmatprep.mubr.bf16.mxu1 %v4807_v21  ;;  %v4225_v21 = vcombine.high %v453_v57, %v457_v59  ;;  %v310_v8 = vld [vmem:[#allocation5 + $0x3d8] sm:$0xff]  ;;  %v4321_v43 = vcombine.high %v549_v37, %v553_v7  ;;  %v4320_v49 = vcombine.low %v549_v37, %v553_v7 }
 0x15d   :  { %v4082_v50 = vcombine.low %v310_v8, %v314_v39  ;;  %v298_v57 = vld [vmem:[#allocation5 + $0x378] sm:$0xff] }
 0x15e   :  { %3002 = vmatpush1.bf16.msra.mxu0 %v4248_v9  ;;  %v4083_v9 = vcombine.high %v310_v8, %v314_v39  ;;  %v262_v37 = vld [vmem:[#allocation5 + $0x258] sm:$0xff] }
 0x15f   :  { %3080 = vmatpush1.bf16.msra.mxu1 %v4010_v10  ;;  %3003 = vmatprep.subr.bf16.mxu0 %v4241_v45  ;;  %v541_v10 = vld [vmem:[#allocation5 + $0xb10] sm:$0xff]  ;;  %v266_v7 = vld [vmem:[#allocation5 + $0x278] sm:$0xff] }
 0x160   :  { %3081 = vmatprep.subr.bf16.mxu1 %v4003_v46  ;;  %v545_v45 = vld [vmem:[#allocation5 + $0xb30] sm:$0xff]  ;;  %v302_v46 = vld [vmem:[#allocation5 + $0x398] sm:$0xff] }
 0x161   :  { %v4313_v51 = vcombine.high %v541_v10, %v545_v45  ;;  %v4312_v59 = vcombine.low %v541_v10, %v545_v45  ;;  %v4074_v60 = vcombine.low %v302_v46, %v306_v48  ;;  %v4035_v45 = vcombine.high %v262_v37, %v266_v7 }
 0x162   :  { %3004 = vmatpush1.bf16.msra.mxu0 %v4240_v53  ;;  %v4075_v53 = vcombine.high %v302_v46, %v306_v48  ;;  %v366_v46 = vld [vmem:[#allocation5 + $0x598] sm:$0xff] }
 0x163   :  { %3082 = vmatpush1.bf16.msra.mxu1 %v4002_v54  ;;  %3005 = vmatprep.subr.bf16.mxu0 %v4233_v58  ;;  %v533_v54 = vld [vmem:[#allocation5 + $0xad0] sm:$0xff]  ;;  %v370_v48 = vld [vmem:[#allocation5 + $0x5b8] sm:$0xff] }
 0x164   :  { %3083 = vmatprep.subr.bf16.mxu1 %v3995_v55  ;;  %v537_v58 = vld [vmem:[#allocation5 + $0xaf0] sm:$0xff]  ;;  %v294_v55 = vld [vmem:[#allocation5 + $0x358] sm:$0xff] }
 0x165   :  { %v4305_v61 = vcombine.high %v533_v54, %v537_v58  ;;  %v4304_v5 = vcombine.low %v533_v54, %v537_v58  ;;  %v4066_v31 = vcombine.low %v294_v55, %v298_v57  ;;  %v4034_v58 = vcombine.low %v262_v37, %v266_v7  ;;  %v326_v37 = vld [vmem:[#allocation5 + $0x458] sm:$0xff] }
 0x166   :  { %3006 = vmatpush1.bf16.msra.mxu0 %v4232_v63  ;;  %v4067_v63 = vcombine.high %v294_v55, %v298_v57  ;;  %v362_v57 = vld [vmem:[#allocation5 + $0x578] sm:$0xff] }
 0x167   :  { %3084 = vmatpush1.bf16.msra.mxu1 %v3994_v1  ;;  %3007 = vmatprep.subr.bf16.mxu0 %v4225_v21  ;;  %v525_v1 = vld [vmem:[#allocation5 + $0xa90] sm:$0xff]  ;;  %v330_v7 = vld [vmem:[#allocation5 + $0x478] sm:$0xff] }
 0x168   :  { %3085 = vmatprep.subr.bf16.mxu1 %v3987_v2  ;;  %v529_v21 = vld [vmem:[#allocation5 + $0xab0] sm:$0xff]  ;;  %v286_v2 = vld [vmem:[#allocation5 + $0x318] sm:$0xff] }
 0x169   :  { %v4297_v32 = vcombine.high %v525_v1, %v529_v21  ;;  %v4296_v16 = vcombine.low %v525_v1, %v529_v21  ;;  %v4058_v17 = vcombine.low %v286_v2, %v290_v4 }
 0x16a   :  { %3008 = vmatpush1.bf16.msra.mxu0 %v4224_v6  ;;  %v4059_v6 = vcombine.high %v286_v2, %v290_v4  ;;  %v350_v4 = vld [vmem:[#allocation5 + $0x518] sm:$0xff] }
 0x16b   :  { %3086 = vmatpush1.bf16.msra.mxu1 %v3986_v11  ;;  %3009 = vmatprep.subr.bf16.mxu0 %v4217_v13  ;;  %v517_v11 = vld [vmem:[#allocation5 + $0xa50] sm:$0xff] }
 0x16c   :  { %3087 = vmatprep.subr.bf16.mxu1 %v3979_v14  ;;  %v521_v13 = vld [vmem:[#allocation5 + $0xa70] sm:$0xff]  ;;  %v278_v14 = vld [vmem:[#allocation5 + $0x2d8] sm:$0xff] }
 0x16d   :  { %v4289_v18 = vcombine.high %v517_v11, %v521_v13  ;;  %v4288_v28 = vcombine.low %v517_v11, %v521_v13  ;;  %v4050_v29 = vcombine.low %v278_v14, %v282_v15 }
 0x16e   :  { %3010 = vmatpush1.bf16.msra.mxu0 %v4216_v19  ;;  %v4051_v19 = vcombine.high %v278_v14, %v282_v15 }
 0x16f   :  { %3088 = vmatpush1.bf16.msra.mxu1 %v3978_v20  ;;  %3011 = vmatprep.subr.bf16.mxu0 %v4337_v23  ;;  %v509_v20 = vld [vmem:[#allocation5 + $0xa10] sm:$0xff] }
 0x170   :  { %3089 = vmatprep.subr.bf16.mxu1 %v3971_v25  ;;  %v513_v23 = vld [vmem:[#allocation5 + $0xa30] sm:$0xff]  ;;  %v270_v25 = vld [vmem:[#allocation5 + $0x298] sm:$0xff] }
 0x171   :  { %v4281_v30 = vcombine.high %v509_v20, %v513_v23  ;;  %v4280_v39 = vcombine.low %v509_v20, %v513_v23 }
 0x172   :  { %3012 = vmatpush2.bf16.msra.mxu0 %v4336_v33  ;;  %v4043_v33 = vcombine.high %v270_v25, %v274_v26 }
 0x173   :  { %3090 = vmatpush1.bf16.msra.mxu1 %v3970_v34  ;;  %3013 = vmatprep.subr.bf16.mxu0 %v4329_v35  ;;  %v374_v34 = vld [vmem:[#allocation5 + $0x5d8] sm:$0xff] }
 0x174   :  { %3091 = vmatprep.subr.bf16.mxu1 %v3963_v36  ;;  %v378_v35 = vld [vmem:[#allocation5 + $0x5f8] sm:$0xff] }
 0x176   :  { %3014 = vmatpush2.bf16.msra.mxu0 %v4328_v41 }
 0x177   :  { %3092 = vmatpush1.bf16.msra.mxu1 %v3962_v42  ;;  %3015 = vmatprep.subr.bf16.mxu0 %v4321_v43  ;;  %v4042_v42 = vcombine.low %v270_v25, %v274_v26  ;;  %v4147_v43 = vcombine.high %v374_v34, %v378_v35 }
 0x178   :  { %3093 = vmatprep.subr.bf16.mxu1 %v4083_v9 }
 0x17a   :  { %3016 = vmatpush2.bf16.msra.mxu0 %v4320_v49 }
 0x17b   :  { %3094 = vmatpush2.bf16.msra.mxu1 %v4082_v50  ;;  %3017 = vmatprep.subr.bf16.mxu0 %v4313_v51  ;;  %v254_v50 = vld [vmem:[#allocation5 + $0x218] sm:$0xff] }
 0x17c   :  { %3095 = vmatprep.subr.bf16.mxu1 %v4075_v53  ;;  %v258_v51 = vld [vmem:[#allocation5 + $0x238] sm:$0xff]  ;;  %v4146_v53 = vcombine.low %v374_v34, %v378_v35 }
 0x17d   :  { %v4027_v55 = vcombine.high %v254_v50, %v258_v51 }
 0x17e   :  { %3018 = vmatpush2.bf16.msra.mxu0 %v4312_v59  ;;  %v502_v59 = vld [vmem:[#allocation5 + $0x9d8] sm:$0xff] }
 0x17f   :  { %3096 = vmatpush2.bf16.msra.mxu1 %v4074_v60  ;;  %3019 = vmatprep.subr.bf16.mxu0 %v4305_v61  ;;  %v506_v60 = vld [vmem:[#allocation5 + $0x9f8] sm:$0xff] }
 0x180   :  { %3097 = vmatprep.subr.bf16.mxu1 %v4067_v63  ;;  %v4026_v63 = vcombine.low %v254_v50, %v258_v51  ;;  %v4275_v2 = vcombine.high %v502_v59, %v506_v60  ;;  %v4274_v13 = vcombine.low %v502_v59, %v506_v60 }
 0x182   :  { %3020 = vmatpush2.bf16.msra.mxu0 %v4304_v5  ;;  %v354_v5 = vld [vmem:[#allocation5 + $0x538] sm:$0xff] }
 0x183   :  { %3098 = vmatpush2.bf16.msra.mxu1 %v4066_v31  ;;  %3021 = vmatprep.subr.bf16.mxu0 %v4297_v32  ;;  %v494_v31 = vld [vmem:[#allocation5 + $0x998] sm:$0xff]  ;;  %v4123_v14 = vcombine.high %v350_v4, %v354_v5  ;;  %v4122_v20 = vcombine.low %v350_v4, %v354_v5 }
 0x184   :  { %3099 = vmatprep.subr.bf16.mxu1 %v4059_v6  ;;  %v498_v32 = vld [vmem:[#allocation5 + $0x9b8] sm:$0xff] }
 0x185   :  { %v4267_v15 = vcombine.high %v494_v31, %v498_v32  ;;  %v4266_v23 = vcombine.low %v494_v31, %v498_v32 }
 0x186   :  { %3022 = vmatpush2.bf16.msra.mxu0 %v4296_v16  ;;  %v342_v16 = vld [vmem:[#allocation5 + $0x4d8] sm:$0xff] }
 0x187   :  { %3100 = vmatpush2.bf16.msra.mxu1 %v4058_v17  ;;  %3023 = vmatprep.subr.bf16.mxu0 %v4289_v18  ;;  %v346_v17 = vld [vmem:[#allocation5 + $0x4f8] sm:$0xff] }
 0x188   :  { %3101 = vmatprep.subr.bf16.mxu1 %v4051_v19  ;;  %v486_v18 = vld [vmem:[#allocation5 + $0x958] sm:$0xff]  ;;  %v4115_v25 = vcombine.high %v342_v16, %v346_v17  ;;  %v4114_v34 = vcombine.low %v342_v16, %v346_v17 }
 0x189   :  { %v2701_v36 = vpop.f32.mrf.mxu0  ;;  %v490_v19 = vld [vmem:[#allocation5 + $0x978] sm:$0xff] }
 0x18a   :  { %v2702_v8 = vadd.f32 %v2701_v36, %v4863_v0  ;;  %3024 = vmatpush2.bf16.msra.mxu0 %v4288_v28  ;;  %v4259_v26 = vcombine.high %v486_v18, %v490_v19  ;;  %v334_v28 = vld [vmem:[#allocation5 + $0x498] sm:$0xff]  ;;  %v4258_v35 = vcombine.low %v486_v18, %v490_v19 }
 0x18b   :  { %3102 = vmatpush2.bf16.msra.mxu1 %v4050_v29  ;;  %v2703_v41 = vpop.f32.mrf.mxu0  ;;  %3025 = vmatprep.subr.bf16.mxu0 %v4281_v30  ;;  %v338_v29 = vld [vmem:[#allocation5 + $0x4b8] sm:$0xff] }
 0x18c   :  { %v4880_v9 = vadd.f32 %v4869_v24, %v2702_v8  ;;  %v2704_v10 = vadd.f32 %v2703_v41, %v4865_v12  ;;  %3103 = vmatprep.subr.bf16.mxu1 %v4043_v33  ;;  %v4139_v24 = vcombine.high %v366_v46, %v370_v48  ;;  %v358_v12 = vld [vmem:[#allocation5 + $0x558] sm:$0xff]  ;;  %v4106_v41 = vcombine.low %v334_v28, %v338_v29 }
 0x18d   :  { %v2705_v49 = vpop.f32.mrf.mxu0  ;;  %v4131_v1 = vcombine.high %v358_v12, %v362_v57  ;;  %v4130_v11 = vcombine.low %v358_v12, %v362_v57  ;;  %v478_v30 = vld [vmem:[#allocation5 + $0x918] sm:$0xff] }
 0x18e   :  { %v4884_v0 = vadd.f32 %v4871_v27, %v2704_v10  ;;  %3026 = vmatpush2.bf16.msra.mxu0 %v4280_v39  ;;  %v4138_v27 = vcombine.low %v366_v46, %v370_v48  ;;  %v482_v33 = vld [vmem:[#allocation5 + $0x938] sm:$0xff]  ;;  %v4098_v49 = vcombine.low %v326_v37, %v330_v7 }
 0x18f   :  { %3104 = vmatpush2.bf16.msra.mxu1 %v4042_v42  ;;  %v2706_v54 = vpop.f32.mrf.mxu0  ;;  %3118 = vmatprep.subr.bf16.mxu0 %v4147_v43  ;;  %v4251_v36 = vcombine.high %v478_v30, %v482_v33  ;;  %v470_v8 = vld [vmem:[#allocation5 + $0x8d8] sm:$0xff]  ;;  %v4250_v42 = vcombine.low %v478_v30, %v482_v33 }
 0x190   :  { %3105 = vmatprep.subr.bf16.mxu1 %v4035_v45  ;;  %v474_v39 = vld [vmem:[#allocation5 + $0x8f8] sm:$0xff] }
 0x191   :  { %3028 = vmatmul.mubr.bf16.vlgmr.msra.gmra.mxu0 %v4844_v3  ;;  %v4243_v43 = vcombine.high %v470_v8, %v474_v39  ;;  %v318_v10 = vld [vmem:[#allocation5 + $0x418] sm:$0xff]  ;;  %v4242_v50 = vcombine.low %v470_v8, %v474_v39 }
 0x192   :  { %v4887_v61 = vpop.f32.mrf.mxu1  ;;  %3119 = vmatpush1.bf16.msra.mxu0 %v4146_v53  ;;  %3150 = vmatprep.mubr.bf16.mxu0 %v4809_v22  ;;  %v322_v45 = vld [vmem:[#allocation5 + $0x438] sm:$0xff] }
 0x193   :  { %3106 = vmatpush2.bf16.msra.mxu1 %v4034_v58  ;;  %3120 = vmatprep.subr.bf16.mxu0 %v4139_v24  ;;  %v462_v46 = vld [vmem:[#allocation5 + $0x898] sm:$0xff]  ;;  %v4091_v51 = vcombine.high %v318_v10, %v322_v45  ;;  %v4090_v12 = vcombine.low %v318_v10, %v322_v45 }
 0x194   :  { %v4890_v21 = vpop.f32.mrf.mxu1  ;;  %3107 = vmatprep.subr.bf16.mxu1 %v4027_v55  ;;  %v466_v48 = vld [vmem:[#allocation5 + $0x8b8] sm:$0xff] }
 0x195   :  { %v4235_v53 = vcombine.high %v462_v46, %v466_v48  ;;  %v438_v54 = vld [vmem:[#allocation5 + $0x7d8] sm:$0xff]  ;;  %v4234_v57 = vcombine.low %v462_v46, %v466_v48 }
 0x196   :  { %v2787_v6 = vpop.f32.mrf.mxu1  ;;  %3121 = vmatpush1.bf16.msra.mxu0 %v4138_v27  ;;  %v442_v58 = vld [vmem:[#allocation5 + $0x7f8] sm:$0xff] }
 0x197   :  { %3108 = vmatpush2.bf16.msra.mxu1 %v4026_v63  ;;  %3122 = vmatprep.subr.bf16.mxu0 %v4131_v1  ;;  %v454_v24 = vld [vmem:[#allocation5 + $0x858] sm:$0xff]  ;;  %v4211_v59 = vcombine.high %v438_v54, %v442_v58  ;;  %v4210_v4 = vcombine.low %v438_v54, %v442_v58 }
 0x198   :  { %v2788_v22 = vpop.f32.mrf.mxu1  ;;  %3159 = vmatprep.subr.bf16.mxu1 %v4275_v2  ;;  %v458_v55 = vld [vmem:[#allocation5 + $0x878] sm:$0xff] }
 0x199   :  { %v4227_v60 = vcombine.high %v454_v24, %v458_v55  ;;  %v430_v27 = vld [vmem:[#allocation5 + $0x798] sm:$0xff]  ;;  %v4226_v5 = vcombine.low %v454_v24, %v458_v55 }
 0x19a   :  { %3110 = vmatmul.mubr.bf16.vlgmr.msra.gmra.mxu1 %v4823_v40  ;;  %3123 = vmatpush1.bf16.msra.mxu0 %v4130_v11  ;;  %v4107_v40 = vcombine.high %v334_v28, %v338_v29  ;;  %v434_v63 = vld [vmem:[#allocation5 + $0x7b8] sm:$0xff] }
 0x19b   :  { %3160 = vmatpush1.bf16.msra.mxu1 %v4274_v13  ;;  %3124 = vmatprep.subr.bf16.mxu0 %v4123_v14  ;;  %v446_v1 = vld [vmem:[#allocation5 + $0x818] sm:$0xff]  ;;  %v4203_v31 = vcombine.high %v430_v27, %v434_v63  ;;  %v4202_v22 = vcombine.low %v430_v27, %v434_v63 }
 0x19c   :  { %3161 = vmatprep.subr.bf16.mxu1 %v4267_v15  ;;  %3191 = vmatprep.mubr.bf16.mxu1 %v4832_v52  ;;  %v4099_v52 = vcombine.high %v326_v37, %v330_v7  ;;  %v450_v2 = vld [vmem:[#allocation5 + $0x838] sm:$0xff] }
 0x19d   :  { %v4219_v32 = vcombine.high %v446_v1, %v450_v2  ;;  %v422_v6 = vld [vmem:[#allocation5 + $0x758] sm:$0xff]  ;;  %v4218_v15 = vcombine.low %v446_v1, %v450_v2 }
 0x19e   :  { %3125 = vmatpush1.bf16.msra.mxu0 %v4122_v20  ;;  %v426_v11 = vld [vmem:[#allocation5 + $0x778] sm:$0xff] }
 0x19f   :  { %3162 = vmatpush1.bf16.msra.mxu1 %v4266_v23  ;;  %3126 = vmatprep.subr.bf16.mxu0 %v4115_v25  ;;  %v566_v13 = vld [vmem:[#allocation5 + $0xbd8] sm:$0xff]  ;;  %v4195_v16 = vcombine.high %v422_v6, %v426_v11  ;;  %v4194_v25 = vcombine.low %v422_v6, %v426_v11 }
 0x1a0   :  { %3163 = vmatprep.subr.bf16.mxu1 %v4259_v26  ;;  %v570_v14 = vld [vmem:[#allocation5 + $0xbf8] sm:$0xff] }
 0x1a1   :  { %v4339_v17 = vcombine.high %v566_v13, %v570_v14  ;;  %v414_v18 = vld [vmem:[#allocation5 + $0x718] sm:$0xff]  ;;  %v4338_v26 = vcombine.low %v566_v13, %v570_v14 }
 0x1a2   :  { %3127 = vmatpush1.bf16.msra.mxu0 %v4114_v34  ;;  %v418_v19 = vld [vmem:[#allocation5 + $0x738] sm:$0xff] }
 0x1a3   :  { %3164 = vmatpush1.bf16.msra.mxu1 %v4258_v35  ;;  %3128 = vmatprep.subr.bf16.mxu0 %v4107_v40  ;;  %v558_v20 = vld [vmem:[#allocation5 + $0xb98] sm:$0xff]  ;;  %v4187_v28 = vcombine.high %v414_v18, %v418_v19  ;;  %v4186_v40 = vcombine.low %v414_v18, %v418_v19 }
 0x1a4   :  { %3165 = vmatprep.subr.bf16.mxu1 %v4251_v36  ;;  %v562_v23 = vld [vmem:[#allocation5 + $0xbb8] sm:$0xff] }
 0x1a5   :  { %v4331_v29 = vcombine.high %v558_v20, %v562_v23  ;;  %v406_v30 = vld [vmem:[#allocation5 + $0x6d8] sm:$0xff]  ;;  %v4330_v36 = vcombine.low %v558_v20, %v562_v23 }
 0x1a6   :  { %3129 = vmatpush1.bf16.msra.mxu0 %v4106_v41  ;;  %v410_v33 = vld [vmem:[#allocation5 + $0x6f8] sm:$0xff] }
 0x1a7   :  { %3166 = vmatpush1.bf16.msra.mxu1 %v4250_v42  ;;  %3130 = vmatprep.subr.bf16.mxu0 %v4099_v52  ;;  %v550_v34 = vld [vmem:[#allocation5 + $0xb58] sm:$0xff]  ;;  %v4179_v37 = vcombine.high %v406_v30, %v410_v33  ;;  %v4178_v52 = vcombine.low %v406_v30, %v410_v33 }
 0x1a8   :  { %3167 = vmatprep.subr.bf16.mxu1 %v4243_v43  ;;  %v554_v35 = vld [vmem:[#allocation5 + $0xb78] sm:$0xff] }
 0x1a9   :  { %v4323_v7 = vcombine.high %v550_v34, %v554_v35  ;;  %v398_v8 = vld [vmem:[#allocation5 + $0x698] sm:$0xff]  ;;  %v4322_v43 = vcombine.low %v550_v34, %v554_v35 }
 0x1aa   :  { %3131 = vmatpush1.bf16.msra.mxu0 %v4098_v49  ;;  %v402_v39 = vld [vmem:[#allocation5 + $0x6b8] sm:$0xff] }
 0x1ab   :  { %3168 = vmatpush1.bf16.msra.mxu1 %v4242_v50  ;;  %3132 = vmatprep.subr.bf16.mxu0 %v4091_v51  ;;  %v542_v41 = vld [vmem:[#allocation5 + $0xb18] sm:$0xff]  ;;  %v4171_v10 = vcombine.high %v398_v8, %v402_v39  ;;  %v4170_v51 = vcombine.low %v398_v8, %v402_v39 }
 0x1ac   :  { %3169 = vmatprep.subr.bf16.mxu1 %v4235_v53  ;;  %v546_v42 = vld [vmem:[#allocation5 + $0xb38] sm:$0xff] }
 0x1ad   :  { %v4315_v45 = vcombine.high %v542_v41, %v546_v42  ;;  %v390_v46 = vld [vmem:[#allocation5 + $0x658] sm:$0xff]  ;;  %v4314_v53 = vcombine.low %v542_v41, %v546_v42  ;;  %v4535_v41 = vld [vmem:[#allocation8 + $0xb8] sm:$0xff]  }
 0x1ae   :  { %3133 = vmatpush1.bf16.msra.mxu0 %v4090_v12  ;;  %v394_v48 = vld [vmem:[#allocation5 + $0x678] sm:$0xff] }
 0x1af   :  { %3170 = vmatpush1.bf16.msra.mxu1 %v4234_v57  ;;  %3134 = vmatprep.subr.bf16.mxu0 %v4211_v59  ;;  %v534_v49 = vld [vmem:[#allocation5 + $0xad8] sm:$0xff]  ;;  %v4163_v54 = vcombine.high %v390_v46, %v394_v48  ;;  %v4162_v59 = vcombine.low %v390_v46, %v394_v48  ;;  %v4540_v48 = vld [vmem:[#allocation8 + $0x68] sm:$0xff]  }
 0x1b0   :  { %3171 = vmatprep.subr.bf16.mxu1 %v4227_v60  ;;  %v538_v50 = vld [vmem:[#allocation5 + $0xaf8] sm:$0xff] }
 0x1b1   :  { %v4307_v58 = vcombine.high %v534_v49, %v538_v50  ;;  %v382_v24 = vld [vmem:[#allocation5 + $0x618] sm:$0xff]  ;;  %v4306_v60 = vcombine.low %v534_v49, %v538_v50  ;;  %v4541_v49 = vld [vmem:[#allocation8 + $0xe8] sm:$0xff]  }
 0x1b2   :  { %3135 = vmatpush2.bf16.msra.mxu0 %v4210_v4  ;;  %v386_v55 = vld [vmem:[#allocation5 + $0x638] sm:$0xff]  ;;  %v595_v4 = vsub.s32 3, %v4786_v47  ;;  %v4542_v50 = vld [vmem:[#allocation8 + $0x28] sm:$0xff]  }
 0x1b3   :  { %3172 = vmatpush1.bf16.msra.mxu1 %v4226_v5  ;;  %3136 = vmatprep.subr.bf16.mxu0 %v4203_v31  ;;  %v526_v12 = vld [vmem:[#allocation5 + $0xa98] sm:$0xff]  ;;  %v4155_v27 = vcombine.high %v382_v24, %v386_v55  ;;  %v4154_v6 = vcombine.low %v382_v24, %v386_v55  ;;  %v4548_v24 = vld [vmem:[#allocation8 + $0x58] sm:$0xff]  }
 0x1b4   :  { %3173 = vmatprep.subr.bf16.mxu1 %v4219_v32  ;;  %v530_v57 = vld [vmem:[#allocation5 + $0xab8] sm:$0xff]  ;;  %v4910_v55 = vld [vmem:[#allocation7] sm:$0xff] }
 0x1b5   :  { %v4299_v63 = vcombine.high %v526_v12, %v530_v57  ;;  %v574_v1 = vld [vmem:[#allocation5 + $0xc18] sm:$0xff]  ;;  %v4298_v13 = vcombine.low %v526_v12, %v530_v57  ;;  %v4549_v57 = vld [vmem:[#allocation8 + $0xd8] sm:$0xff]  }
 0x1b6   :  { %3137 = vmatpush2.bf16.msra.mxu0 %v4202_v22  ;;  %v578_v2 = vld [vmem:[#allocation5 + $0xc38] sm:$0xff] }
 0x1b7   :  { %3174 = vmatpush1.bf16.msra.mxu1 %v4218_v15  ;;  %3138 = vmatprep.subr.bf16.mxu0 %v4195_v16  ;;  %v518_v31 = vld [vmem:[#allocation5 + $0xa58] sm:$0xff]  ;;  %v4347_v14 = vcombine.high %v574_v1, %v578_v2  ;;  %v596_v15 = vrot.slane %v4858_v38, %v595_v4  ;;  %v4346_v19 = vcombine.low %v574_v1, %v578_v2 }
 0x1b8   :  { %3175 = vmatprep.subr.bf16.mxu1 %v4339_v17  ;;  %v522_v32 = vld [vmem:[#allocation5 + $0xa78] sm:$0xff] }
 0x1b9   :  { %v4291_v22 = vcombine.high %v518_v31, %v522_v32  ;;  %v510_v17 = vld [vmem:[#allocation5 + $0xa18] sm:$0xff]  ;;  %v4290_v23 = vcombine.low %v518_v31, %v522_v32  ;;  %v4556_v32 = vld [vmem:[#allocation8 + $0x48] sm:$0xff]  }
 0x1ba   :  { %3139 = vmatpush2.bf16.msra.mxu0 %v4194_v25  ;;  %v514_v18 = vld [vmem:[#allocation5 + $0xa38] sm:$0xff]  ;;  %v4532_v25 = vld [vmem:[#allocation8 + $0x78] sm:$0xff]  }
 0x1bb   :  { %3176 = vmatpush2.bf16.msra.mxu1 %v4338_v26  ;;  %3140 = vmatprep.subr.bf16.mxu0 %v4187_v28  ;;  %v4283_v26 = vcombine.high %v510_v17, %v514_v18  ;;  %v2786_v28 = vadd.f32 %v4890_v21, %v596_v15  ;;  %v4282_v34 = vcombine.low %v510_v17, %v514_v18  ;;  %v4539_v46 = vld [vmem:[#allocation8 + $0xb0] sm:$0xff]   ;;  %v4562_v15 = vld [vmem:[#allocation8] sm:$0xff]   ;;  %v4564_v18 = vld [vmem:[#allocation8 + $0x178] sm:$0xff]  }
 0x1bc   :  { %3177 = vmatprep.subr.bf16.mxu1 %v4331_v29  ;;  %v4553_v1 = vld [vmem:[#allocation8 + $0xd0] sm:$0xff]   ;;  %v4563_v17 = vld [vmem:[#allocation8 + $0x80] sm:$0xff]  }
 0x1bd   :  { %v4554_v4 = vld [vmem:[#allocation8 + $0x10] sm:$0xff]  }
 0x1be   :  { %3141 = vmatpush2.bf16.msra.mxu0 %v4186_v40  ;;  %v4533_v40 = vld [vmem:[#allocation8 + $0xf8] sm:$0xff]   ;;  %v4555_v31 = vld [vmem:[#allocation8 + $0x90] sm:$0xff]  }
 0x1bf   :  { %3178 = vmatpush2.bf16.msra.mxu1 %v4330_v36  ;;  %3142 = vmatprep.subr.bf16.mxu0 %v4179_v37  ;;  %v3242_v36 = vmax.f32 %v4884_v0, 0.0  ;;  %v4538_v0 = vld [vmem:[#allocation8 + $0x30] sm:$0xff]  }
 0x1c0   :  { %3179 = vmatprep.subr.bf16.mxu1 %v4323_v7  ;;  %v4534_v7 = vld [vmem:[#allocation8 + $0x38] sm:$0xff]  }
 0x1c2   :  { %3143 = vmatpush2.bf16.msra.mxu0 %v4178_v52  ;;  %v4537_v52 = vld [vmem:[#allocation8 + $0xf0] sm:$0xff]  }
 0x1c3   :  { %3180 = vmatpush2.bf16.msra.mxu1 %v4322_v43  ;;  %3144 = vmatprep.subr.bf16.mxu0 %v4171_v10  ;;  %v3250_v43 = vpack.c.bf16 %v3242_v36, %v3242_v36  ;;  %v4585_v36 = vld [vmem:[#allocation8 + $0x1a8] sm:$0xff]  }
 0x1c4   :  { %3181 = vmatprep.subr.bf16.mxu1 %v4315_v45 }
 0x1c6   :  { %3145 = vmatpush2.bf16.msra.mxu0 %v4170_v51  ;;  %v4543_v51 = vld [vmem:[#allocation8 + $0xa8] sm:$0xff]  }
 0x1c7   :  { %3182 = vmatpush2.bf16.msra.mxu1 %v4314_v53  ;;  %3146 = vmatprep.subr.bf16.mxu0 %v4163_v54  ;;  %v4544_v53 = vld [vmem:[#allocation8 + $0x60] sm:$0xff]  }
 0x1c8   :  { %3183 = vmatprep.subr.bf16.mxu1 %v4307_v58  ;;  %v4546_v54 = vld [vmem:[#allocation8 + $0x20] sm:$0xff]  }
 0x1c9   :  { %v4895_v5 = vpop.f32.mrf.mxu0  ;;  %v4547_v58 = vld [vmem:[#allocation8 + $0xa0] sm:$0xff]  }
 0x1ca   :  { %3147 = vmatpush2.bf16.msra.mxu0 %v4162_v59  ;;  %v4550_v59 = vld [vmem:[#allocation8 + $0x18] sm:$0xff]  }
 0x1cb   :  { %3184 = vmatpush2.bf16.msra.mxu1 %v4306_v60  ;;  %v2826_v11 = vpop.f32.mrf.mxu0  ;;  %3148 = vmatprep.subr.bf16.mxu0 %v4155_v27  ;;  %v4551_v60 = vld [vmem:[#allocation8 + $0x98] sm:$0xff]   ;;  %v4552_v27 = vld [vmem:[#allocation8 + $0x50] sm:$0xff]  }
 0x1cc   :  { %3185 = vmatprep.subr.bf16.mxu1 %v4299_v63  ;;  %v2827_v38 = vadd.f32 %v2826_v11, %v2786_v28  ;;  %v4557_v11 = vld [vmem:[#allocation8 + $0xc8] sm:$0xff]   ;;  %v4581_v28 = vld [vmem:[#allocation8 + $0x1b8] sm:$0xff]  }
 0x1cd   :  { %v2828_v16 = vpop.f32.mrf.mxu0 }
 0x1ce   :  { %3149 = vmatpush2.bf16.msra.mxu0 %v4154_v6  ;;  %v3241_v16 = vmax.f32 %v4880_v9, 0.0  ;;  %v4567_v9 = vld [vmem:[#allocation8 + $0x130] sm:$0xff]  }
 0x1cf   :  { %3186 = vmatpush2.bf16.msra.mxu1 %v4298_v13  ;;  %v2829_v20 = vpop.f32.mrf.mxu0  ;;  %3214 = vmatprep.subr.bf16.mxu0 %v4347_v14  ;;  %v4558_v13 = vld [vmem:[#allocation8 + $0x8] sm:$0xff]  }
 0x1d0   :  { %3187 = vmatprep.subr.bf16.mxu1 %v4291_v22  ;;  %v4559_v14 = vld [vmem:[#allocation8 + $0x88] sm:$0xff]   ;;  %v4580_v20 = vld [vmem:[#allocation8 + $0x1f8] sm:$0xff]  }
 0x1d1   :  { %3151 = vmatmul.mubr.bf16.vlgmr.msra.gmra.mxu0 %v4827_v44  ;;  %v4900_v29 = vpop.f32.mrf.mxu0 }
 0x1d2   :  { %v4902_v30 = vpop.f32.mrf.mxu1  ;;  %3215 = vmatpush1.bf16.msra.mxu0 %v4346_v19  ;;  %3232 = vmatprep.mubr.bf16.mxu0 %v4737_v56  ;;  %v4536_v56 = vld [vmem:[#allocation8 + $0x70] sm:$0xff]  }
 0x1d3   :  { %3188 = vmatpush2.bf16.msra.mxu1 %v4290_v23  ;;  %v2908_v33 = vpop.f32.mrf.mxu0  ;;  %4417 = vmatprep.subr.bf16.mxu0 %v4532_v25  ;;  %v4565_v23 = vld [vmem:[#allocation8 + $0x138] sm:$0xff]   ;;  %v3249_v25 = vpack.c.bf16 %v3241_v16, %v3241_v16 }
 0x1d4   :  { %v2867_v35 = vpop.f32.mrf.mxu1  ;;  %3189 = vmatprep.subr.bf16.mxu1 %v4283_v26  ;;  %v4566_v26 = vld [vmem:[#allocation8 + $0x170] sm:$0xff]  }
 0x1d5   :  { %v2868_v21 = vadd.f32 %v2867_v35, %v2827_v38  ;;  %v2910_v37 = vpop.f32.mrf.mxu0  ;;  %v4568_v38 = vld [vmem:[#allocation8 + $0x168] sm:$0xff]  }
 0x1d6   :  { %v2869_v44 = vpop.f32.mrf.mxu1  ;;  %v4569_v35 = vld [vmem:[#allocation8 + $0x128] sm:$0xff]   ;;  %v4571_v37 = vld [vmem:[#allocation8 + $0x120] sm:$0xff]  }
 0x1d7   :  { %v2909_v8 = vadd.f32 %v2908_v33, %v2868_v21  ;;  %3190 = vmatpush2.bf16.msra.mxu1 %v4282_v34  ;;  %v2911_v39 = vpop.f32.mrf.mxu0  ;;  %v4583_v33 = vld [vmem:[#allocation8 + $0x1b0] sm:$0xff]   ;;  %v4584_v34 = vld [vmem:[#allocation8 + $0x1e8] sm:$0xff]   ;;  %v4586_v21 = vld [vmem:[#allocation8 + $0x1e0] sm:$0xff]  }
 0x1d8   :  { %v2870_v42 = vpop.f32.mrf.mxu1  ;;  %4439 = vmatprep.subr.bf16.mxu1 %v4533_v40  ;;  %v4570_v40 = vld [vmem:[#allocation8 + $0x160] sm:$0xff]   ;;  %v4572_v44 = vld [vmem:[#allocation8 + $0x158] sm:$0xff]   ;;  %v4575_v39 = vld [vmem:[#allocation8 + $0x110] sm:$0xff]  }
 0x1d9   :  { %v3244_v10 = vmax.f32 %v2909_v8, 0.0  ;;  %4351 = vmatmul.mubr.msk.bf16.vlgmr.msra.gmra.mxu0 %vm2581_vm0, %v4837_v62  ;;  %v591_v62 = vsub.s32 2, %v4786_v47  ;;  %v4574_v8 = vld [vmem:[#allocation8 + $0x150] sm:$0xff]   ;;  %v4577_v42 = vld [vmem:[#allocation8 + $0x108] sm:$0xff]  }
 0x1da   :  { %3192 = vmatmul.mubr.bf16.vlgmr.msra.gmra.mxu1 %v4844_v3  ;;  %4418 = vmatpush3.bf16.msra.mxu0 %v4534_v7  ;;  %v4545_v3 = vld [vmem:[#allocation8 + $0xe0] sm:$0xff]   ;;  %v4573_v7 = vld [vmem:[#allocation8 + $0x118] sm:$0xff]  }
 0x1db   :  { %v3252_v45 = vpack.c.bf16 %v3244_v10, %v3244_v10  ;;  %4440 = vmatpush3.bf16.msra.mxu1 %v4535_v41  ;;  %3808 = vmatprep.mubr.bf16.mxu0 %v3250_v43  ;;  %v592_v12 = vrot.slane %v4910_v55, %v591_v62  ;;  %v4576_v41 = vld [vmem:[#allocation8 + $0x148] sm:$0xff]   ;;  %v4587_v43 = vld [vmem:[#allocation8 + $0x1a0] sm:$0xff]  }
 0x1dc   :  { %4419 = vmatprep.subr.bf16.mxu0 %v4536_v56  ;;  %4441 = vmatprep.subr.bf16.mxu1 %v4537_v52  ;;  %v4578_v56 = vld [vmem:[#allocation8 + $0x140] sm:$0xff]  }
 0x1dd   :  { %3848 = vmatprep.mubr.bf16.mxu1 %v3252_v45  ;;  %v2784_v63 = vadd.f32 %v4887_v61, %v592_v12  ;;  %v4560_v61 = vld [vmem:[#allocation8 + $0x40] sm:$0xff]   ;;  %v4592_v12 = vld [vmem:[#allocation8 + $0x1c8] sm:$0xff]  }
 0x1de   :  { %4420 = vmatpush3.bf16.msra.mxu0 %v4538_v0  ;;  %v4579_v0 = vld [vmem:[#allocation8 + $0x100] sm:$0xff]  }
 0x1df   :  { %4442 = vmatpush3.bf16.msra.mxu1 %v4539_v46  ;;  %4421 = vmatprep.subr.bf16.mxu0 %v4540_v48  ;;  %v2825_v2 = vadd.f32 %v4895_v5, %v2784_v63  ;;  %v4561_v5 = vld [vmem:[#allocation8 + $0xc0] sm:$0xff]   ;;  %v4588_v48 = vld [vmem:[#allocation8 + $0x1d8] sm:$0xff]  }
 0x1e0   :  { %4443 = vmatprep.subr.bf16.mxu1 %v4541_v49  ;;  %v4595_v63 = vld [vmem:[#allocation8 + $0x180] sm:$0xff]  }
 0x1e1   :  { %v2866_v6 = vadd.f32 %v4902_v30, %v2825_v2  ;;  %v4582_v30 = vld [vmem:[#allocation8 + $0x1f0] sm:$0xff]   ;;  %v603_v2 = vsub.s32 5, %v4786_v47 }
 0x1e2   :  { %4422 = vmatpush3.bf16.msra.mxu0 %v4542_v50  ;;  %v4589_v50 = vld [vmem:[#allocation8 + $0x198] sm:$0xff]  }
 0x1e3   :  { %4444 = vmatpush3.bf16.msra.mxu1 %v4543_v51  ;;  %4423 = vmatprep.subr.bf16.mxu0 %v4544_v53  ;;  %v2907_v22 = vadd.f32 %v4900_v29, %v2866_v6 }
 0x1e4   :  { %4445 = vmatprep.subr.bf16.mxu1 %v4545_v3  ;;  %v4590_v3 = vld [vmem:[#allocation8 + $0x1d0] sm:$0xff]  }
 0x1e5   :  { %v3243_v19 = vmax.f32 %v2907_v22, 0.0 }
 0x1e6   :  { %4424 = vmatpush3.bf16.msra.mxu0 %v4546_v54  ;;  %v4591_v54 = vld [vmem:[#allocation8 + $0x190] sm:$0xff]  }
 0x1e7   :  { %4446 = vmatpush3.bf16.msra.mxu1 %v4547_v58  ;;  %4425 = vmatprep.subr.bf16.mxu0 %v4548_v24  ;;  %v3251_v29 = vpack.c.bf16 %v3243_v19, %v3243_v19 }
 0x1e8   :  { %4447 = vmatprep.subr.bf16.mxu1 %v4549_v57  ;;  %v4593_v57 = vld [vmem:[#allocation8 + $0x188] sm:$0xff]  }
 0x1ea   :  { %4426 = vmatpush3.bf16.msra.mxu0 %v4550_v59 }
 0x1eb   :  { %4448 = vmatpush3.bf16.msra.mxu1 %v4551_v60  ;;  %4427 = vmatprep.subr.bf16.mxu0 %v4552_v27  ;;  %v4594_v27 = vld [vmem:[#allocation8 + $0x1c0] sm:$0xff]  }
 0x1ec   :  { %4449 = vmatprep.subr.bf16.mxu1 %v4553_v1  ;;  %v599_v1 = vsub.s32 4, %v4786_v47 }
 0x1ee   :  { %4428 = vmatpush3.bf16.msra.mxu0 %v4554_v4  ;;  %v600_v4 = vrot.slane %v4910_v55, %v599_v1 }
 0x1ef   :  { %4450 = vmatpush3.bf16.msra.mxu1 %v4555_v31  ;;  %4429 = vmatprep.subr.bf16.mxu0 %v4556_v32  ;;  %v604_v31 = vrot.slane %v4910_v55, %v603_v2 }
 0x1f0   :  { %4451 = vmatprep.subr.bf16.mxu1 %v4557_v11 }
 0x1f2   :  { %4430 = vmatpush3.bf16.msra.mxu0 %v4558_v13 }
 0x1f3   :  { %4452 = vmatpush3.bf16.msra.mxu1 %v4559_v14  ;;  %4431 = vmatprep.subr.bf16.mxu0 %v4560_v61 }
 0x1f4   :  { %4453 = vmatprep.subr.bf16.mxu1 %v4561_v5 }
 0x1f6   :  { %4432 = vmatpush3.bf16.msra.mxu0 %v4562_v15 }
 0x1f7   :  { %4454 = vmatpush3.bf16.msra.mxu1 %v4563_v17  ;;  %4461 = vmatprep.subr.bf16.mxu0 %v4564_v18 }
 0x1f8   :  { %4483 = vmatprep.subr.bf16.mxu1 %v4580_v20 }
 0x1f9   :  { %3809 = vmatmul.mubr.bf16.vlgmr.msra.gmra.mxu0 %v3249_v25 }
 0x1fa   :  { %3849 = vmatmul.mubr.bf16.vlgmr.msra.gmra.mxu1 %v3251_v29  ;;  %4462 = vmatpush3.bf16.msra.mxu0 %v4565_v23 }
 0x1fb   :  { %4463 = vmatprep.subr.bf16.mxu0 %v4566_v26  ;;  %4484 = vmatpush3.bf16.msra.mxu1 %v4581_v28 }
 0x1fc   :  { %4485 = vmatprep.subr.bf16.mxu1 %v4582_v30 }
 0x1fe   :  { %4464 = vmatpush3.bf16.msra.mxu0 %v4567_v9  ;;  %v607_v9 = vsub.s32 6, %v4786_v47 }
 0x1ff   :  { %4465 = vmatprep.subr.bf16.mxu0 %v4568_v38  ;;  %4486 = vmatpush3.bf16.msra.mxu1 %v4583_v33  ;;  %v611_v38 = vsub.s32 7, %v4786_v47 }
 0x200   :  { %4487 = vmatprep.subr.bf16.mxu1 %v4584_v34  ;;  %v608_v34 = vrot.slane %v4910_v55, %v607_v9 }
 0x202   :  { %4466 = vmatpush3.bf16.msra.mxu0 %v4569_v35 }
 0x203   :  { %4467 = vmatprep.subr.bf16.mxu0 %v4570_v40  ;;  %4488 = vmatpush3.bf16.msra.mxu1 %v4585_v36  ;;  %v612_v40 = vrot.slane %v4910_v55, %v611_v38 }
 0x204   :  { %4489 = vmatprep.subr.bf16.mxu1 %v4586_v21 }
 0x206   :  { %4468 = vmatpush3.bf16.msra.mxu0 %v4571_v37 }
 0x207   :  { %4469 = vmatprep.subr.bf16.mxu0 %v4572_v44  ;;  %4490 = vmatpush3.bf16.msra.mxu1 %v4587_v43 }
 0x208   :  { %4491 = vmatprep.subr.bf16.mxu1 %v4588_v48 }
 0x20a   :  { %4470 = vmatpush3.bf16.msra.mxu0 %v4573_v7 }
 0x20b   :  { %4471 = vmatprep.subr.bf16.mxu0 %v4574_v8  ;;  %4492 = vmatpush3.bf16.msra.mxu1 %v4589_v50 }
 0x20c   :  { %4493 = vmatprep.subr.bf16.mxu1 %v4590_v3  ;;  %v4352_v3 = vld [vmem:[#allocation10] ss:$0 sm:$0xff] }
 0x20e   :  { %4472 = vmatpush3.bf16.msra.mxu0 %v4575_v39 }
 0x20f   :  { %4473 = vmatprep.subr.bf16.mxu0 %v4576_v41  ;;  %4494 = vmatpush3.bf16.msra.mxu1 %v4591_v54 }
 0x210   :  { %4495 = vmatprep.subr.bf16.mxu1 %v4592_v12 }
 0x211   :  { %v2947_v52 = vpop.f32.mrf.mxu0 }
 0x212   :  { %v2988_v10 = vpop.f32.mrf.mxu1  ;;  %4474 = vmatpush3.bf16.msra.mxu0 %v4577_v42  ;;  %v2948_v32 = vadd.f32 %v2947_v52, %v600_v4 }
 0x213   :  { %v2949_v45 = vpop.f32.mrf.mxu0  ;;  %4475 = vmatprep.subr.bf16.mxu0 %v4578_v56  ;;  %4496 = vmatpush3.bf16.msra.mxu1 %v4593_v57 }
 0x214   :  { %v2990_v46 = vpop.f32.mrf.mxu1  ;;  %4497 = vmatprep.subr.bf16.mxu1 %v4594_v27  ;;  %v2950_v6 = vadd.f32 %v2949_v45, %v604_v31  ;;  %v2989_v11 = vadd.f32 %v2988_v10, %v2948_v32 }
 0x215   :  { %v2951_v49 = vpop.f32.mrf.mxu0 }
 0x216   :  { %v2992_v51 = vpop.f32.mrf.mxu1  ;;  %4476 = vmatpush3.bf16.msra.mxu0 %v4579_v0  ;;  %v2991_v14 = vadd.f32 %v2990_v46, %v2950_v6 }
 0x217   :  { %v2952_v53 = vpop.f32.mrf.mxu0  ;;  %4498 = vmatpush3.bf16.msra.mxu1 %v4595_v63 }
 0x218   :  { %v2993_v62 = vpop.f32.mrf.mxu1 }
 0x21a   :  { %v3070_v58 = vpop.f32.mrf.mxu1 }
 0x21c   :  { %v3072_v24 = vpop.f32.mrf.mxu1 }
 0x21e   :  { %v3074_v59 = vpop.f32.mrf.mxu1 }
 0x220   :  { %v3075_v60 = vpop.f32.mrf.mxu1 }
 0x251   :  { %v3029_v13 = vpop.f32.mrf.mxu0 }
 0x252   :  { %v3030_v61 = vadd.f32 %v3029_v13, %v2989_v11 }
 0x253   :  { %v3031_v22 = vpop.f32.mrf.mxu0 }
 0x254   :  { %v3071_v5 = vadd.f32 %v3070_v58, %v3030_v61  ;;  %v3032_v15 = vadd.f32 %v3031_v22, %v2991_v14 }
 0x255   :  { %v3033_v16 = vpop.f32.mrf.mxu0 }
 0x256   :  { %v3073_v17 = vadd.f32 %v3072_v24, %v3032_v15  ;;  %v3245_v18 = vmax.f32 %v3071_v5, 0.0 }
 0x257   :  { %v3034_v19 = vpop.f32.mrf.mxu0 }
 0x258   :  { %v3246_v20 = vmax.f32 %v3073_v17, 0.0  ;;  %v3253_v26 = vpack.c.bf16 %v3245_v18, %v3245_v18 }
 0x25a   :  { %v3254_v23 = vpack.c.bf16 %v3246_v20, %v3246_v20  ;;  %v3111_v25 = vpop.f32.mrf.mxu1 }
 0x25b   :  { %v3112_v21 = vadd.f32 %v3111_v25, %v608_v34 }
 0x25c   :  { %v3113_v28 = vpop.f32.mrf.mxu1  ;;  %3888 = vmatprep.mubr.bf16.mxu0 %v3254_v23 }
 0x25d   :  { %3889 = vmatmul.mubr.bf16.vlgmr.msra.gmra.mxu0 %v3253_v26  ;;  %v3114_v44 = vadd.f32 %v3113_v28, %v612_v40 }
 0x25e   :  { %v3115_v29 = vpop.f32.mrf.mxu1 }
 0x260   :  { %v3116_v30 = vpop.f32.mrf.mxu1 }
 0x291   :  { %v3152_v33 = vpop.f32.mrf.mxu0 }
 0x292   :  { %v3153_v7 = vadd.f32 %v3152_v33, %v3112_v21 }
 0x293   :  { %v3154_v35 = vpop.f32.mrf.mxu0 }
 0x294   :  { %v3155_v41 = vadd.f32 %v3154_v35, %v3114_v44 }
 0x295   :  { %v3156_v36 = vpop.f32.mrf.mxu0 }
 0x297   :  { %v3157_v37 = vpop.f32.mrf.mxu0 }
 0x299   :  { %v3234_v8 = vpop.f32.mrf.mxu0 }
 0x29a   :  { %v3193_v39 = vpop.f32.mrf.mxu1 }
 0x29b   :  { %v3194_v42 = vadd.f32 %v3193_v39, %v3153_v7  ;;  %v3236_v56 = vpop.f32.mrf.mxu0 }
 0x29c   :  { %v3195_v52 = vpop.f32.mrf.mxu1 }
 0x29d   :  { %v3235_v43 = vadd.f32 %v3234_v8, %v3194_v42  ;;  %v3196_v10 = vadd.f32 %v3195_v52, %v3155_v41  ;;  %v3238_v47 = vpop.f32.mrf.mxu0 }
 0x29e   :  { %v3197_v0 = vpop.f32.mrf.mxu1 }
 0x29f   :  { %v3237_v45 = vadd.f32 %v3236_v56, %v3196_v10  ;;  %v3239_v46 = vpop.f32.mrf.mxu0  ;;  %v3247_v48 = vmax.f32 %v3235_v43, 0.0 }
 0x2a0   :  { %v3198_v49 = vpop.f32.mrf.mxu1 }
 0x2a1   :  { %v3248_v55 = vmax.f32 %v3237_v45, 0.0  ;;  %v3255_v51 = vpack.c.bf16 %v3247_v48, %v3247_v48 }
 0x2a3   :  { %v3256_v50 = vpack.c.bf16 %v3248_v55, %v3248_v55 }
 0x2a5   :  { %3928 = vmatprep.mubr.bf16.mxu1 %v3256_v50 }
 0x2a6   :  { %3929 = vmatmul.mubr.bf16.vlgmr.msra.gmra.mxu1 %v3255_v51 }
 0x2b9   :  { %v4433_v53 = vpop.f32.mrf.mxu0 }
 0x2ba   :  { %v4455_v62 = vpop.f32.mrf.mxu1 }
 0x2bb   :  { %v4434_v54 = vpop.f32.mrf.mxu0 }
 0x2bc   :  { %v4435_v58 = vadd.f32 %v4434_v54, %v4433_v53  ;;  %v4456_v24 = vpop.f32.mrf.mxu1 }
 0x2bd   :  { %v4457_v12 = vadd.f32 %v4456_v24, %v4455_v62  ;;  %v4436_v57 = vpop.f32.mrf.mxu0 }
 0x2be   :  { %v3811_v59 = vadd.f32 %v4435_v58, %v4352_v3  ;;  %v4458_v60 = vpop.f32.mrf.mxu1 }
 0x2bf   :  { %v4437_v27 = vpop.f32.mrf.mxu0 }
 0x2c0   :  { %v3851_v63 = vadd.f32 %v4457_v12, %v3811_v59  ;;  %v4459_v1 = vpop.f32.mrf.mxu1 }
 0x31d   :  { %v4477_v2 = vpop.f32.mrf.mxu0 }
 0x31f   :  { %v4478_v4 = vpop.f32.mrf.mxu0 }
 0x320   :  { %v4479_v31 = vadd.f32 %v4478_v4, %v4477_v2 }
 0x321   :  { %v4480_v32 = vpop.f32.mrf.mxu0 }
 0x322   :  { %v3891_v6 = vadd.f32 %v4479_v31, %v3851_v63 }
 0x323   :  { %v4481_v11 = vpop.f32.mrf.mxu0 }
 0x366   :  { %v4499_v13 = vpop.f32.mrf.mxu1 }
 0x368   :  { %v4500_v14 = vpop.f32.mrf.mxu1 }
 0x369   :  { %v4501_v61 = vadd.f32 %v4500_v14, %v4499_v13 }
 0x36a   :  { %v4502_v22 = vpop.f32.mrf.mxu1 }
 0x36b   :  { %v3931_v5 = vadd.f32 %v4501_v61, %v3891_v6 }
 0x36c   :  { %v4503_v15 = vpop.f32.mrf.mxu1 }
 0x36d   :  { %3936 = vst [vmem:[#allocation11] sm:$0xff] %v3931_v5 }
 0x36e   :  { %3941 = vsyncadd [#allocation4], 96  ;;  %s4738_s2 = smov [#allocation11]  }
 0x36f   :  { %s3942_s4 = sshll.u32 %s4738_s2, 4  ;;  %s3943_s4 = int_to_ptr.vmem [resolvable:$true] %s3942_s4 }
 0x370   :  { %s4697_s24 = scalar_lea.vmem %s3943_s4, 32  ;;  %s4701_s25 = scalar_lea.vmem %s3943_s4, 128 }
 0x371   :  { %p4698_p11 = scmp.ne.s32.totalorder %s3943_s4, %s4697_s24  ;;  %p4702_p12 = scmp.lt.s32.totalorder %s3943_s4, %s3943_s4 }
 0x372   :  { %p4703_p13 = scmp.lt.s32.totalorder %s4701_s25, %s4697_s24 }
 0x374   :  { %p4704_p0 = por %p4703_p13, %p4702_p12 }
 0x376   :  { %p4705_p1 = pnand %p4704_p0, %p4698_p11 }
 0x378   :  { %4708 = shalt.err (!%p4705_p1)
}
 0x379   :  { %s4739_s26 = smov 2  }
 0x37a   :  { %3948 = dma.vmem_to_hbm [thread:$0]  %s3943_s4, 32, %s4936_s5, [#allocation4], %s4727_s22, %s4727_s22, %s4739_s26  }
 0x37b   :  { %4723 = dma.done.wait [#allocation4], 128  }
 0x37c   :  { %4724 = vsyncadd [#allocation4], 4294967168 }
 0x37d   :  { %3952 = vsyncpa [#allocation3], 1 }
 0x37e   :  { %3953 = vsyncpa [#allocation6], 1 }
 0x37f   :  { %3954 = vsyncpa [#allocation9], 1 }
 0x380   :  { %3955 = vsyncpa [#allocation4], 1 }

</bundles_post_ra>
